<compile_context>
chip_gen: v6e
topology: v6e:2x2x1
jax: 0.10.0
libtpu: 0.0.40
codegen_flags: <defaults>
</compile_context>

<pallas_src>
import functools
import math

import jax
import jax.numpy as jnp
from jax import lax
from jax.experimental import pallas as pl
from jax.experimental.pallas import tpu as pltpu

EPS = 1e-5                      # PyTorch BatchNorm2d default eps
VMEM_LIMIT = 32 * 1024 * 1024   # explicit scoped-VMEM budget (safe on v5e/v6e/v7x)


def _round_up(x, m):
    return (x + m - 1) // m * m


def _cparams(*sem):
    return pltpu.CompilerParams(dimension_semantics=sem,
                                vmem_limit_bytes=VMEM_LIMIT)


# ----------------------------- Pallas kernels -----------------------------

def _linear_relu_kernel(x_ref, w_ref, b_ref, o_ref):
    # bf16 x bf16 -> f32 accumulate on the MXU, bias + ReLU on the VPU.
    z = jnp.dot(x_ref[...], w_ref[...], preferred_element_type=jnp.float32)
    o_ref[...] = jnp.maximum(z + b_ref[...], 0.0)


def _convt_relu_stats_kernel(a_ref, w_ref, b_ref, h_ref, ps_ref, *, tm, rows_valid):
    # a_ref : (1, TM, 4*Cin) bf16  im2col patches of one phase / row tile
    # w_ref : (1, 4*Cin, Cout) bf16 phase weight (taps folded into K)
    # b_ref : (1, Cout) f32
    # h_ref : (1, TM, Cout) f32   ReLU(conv + bias)
    # ps_ref: (1, 8, 2*Cout) f32  masked partial [sum | sumsq] for BatchNorm
    z = jnp.dot(a_ref[0], w_ref[0], preferred_element_type=jnp.float32)
    h = jnp.maximum(z + b_ref[...], 0.0)
    h_ref[0] = h
    # in-kernel valid-row mask (padded rows of the row-tiled slab must not
    # pollute the batch statistics)
    row0 = pl.program_id(1) * tm
    ridx = row0 + lax.broadcasted_iota(jnp.int32, (tm, 1), 0)
    valid = (ridx < rows_valid).astype(jnp.float32)
    hm = h * valid
    s1 = jnp.sum(hm, axis=0, keepdims=True)        # (1, Cout)
    s2 = jnp.sum(hm * h, axis=0, keepdims=True)    # (1, Cout)  (= sum of m*h^2)
    ps_ref[0] = jnp.broadcast_to(jnp.concatenate([s1, s2], axis=-1),
                                 ps_ref.shape[1:])


def _bn_apply_kernel(h_ref, sc_ref, sh_ref, y_ref):
    # second BN pass: y = h * scale + shift (scale/shift already fold mean/var)
    y_ref[0] = h_ref[0] * sc_ref[...] + sh_ref[...]


def _convt_sigmoid_kernel(a_ref, w_ref, b_ref, o_ref):
    z = jnp.dot(a_ref[0], w_ref[0], preferred_element_type=jnp.float32) + b_ref[...]
    # EUP reciprocal keeps the divide off the VALU slots.
    o_ref[0] = pl.reciprocal(1.0 + jnp.exp(-z), approx=True)


# ------------------------------ JAX-side glue -------------------------------

def _phase_im2col(x_nhwc):
    """Sub-pixel im2col: (N,H,W,Cin) -> (4 phases, R_pad, 4*Cin) bf16.

    Phase ph = ro*2 + co produces output pixels (2p+ro, 2q+co); its patch is
    the 2x2 window of the 1-padded input at rows p+ro..p+ro+1, cols q+co..q+co+1.
    """
    n, h, w, c = x_nhwc.shape
    xp = jnp.pad(x_nhwc, ((0, 0), (1, 1), (1, 1), (0, 0)))
    slabs = []
    for ro in (0, 1):
        for co in (0, 1):
            taps = [xp[:, ro + dy:ro + dy + h, co + dx:co + dx + w, :]
                    for dy in (0, 1) for dx in (0, 1)]
            slabs.append(jnp.concatenate(taps, axis=-1).reshape(n * h * w, 4 * c))
    a = jnp.stack(slabs, axis=0)                       # (4, R, 4*Cin) f32
    r = n * h * w
    r_pad = _round_up(r, 8)
    tm = math.gcd(r_pad, 256)                          # (8,128)-aligned row tile
    a = jnp.pad(a, ((0, 0), (0, r_pad - r), (0, 0))).astype(jnp.bfloat16)
    return a, r, r_pad, tm, r_pad // tm


def _phase_weights(wt):
    """PyTorch ConvTranspose2d weight (Cin,Cout,4,4) -> (4, 4*Cin, Cout).

    Tap (dy,dx) of phase (ro,co) uses kernel element (ky,kx)=(3-ro-2dy, 3-co-2dx).
    """
    ws = []
    for ro in (0, 1):
        for co in (0, 1):
            taps = [wt[:, :, 3 - ro - 2 * dy, 3 - co - 2 * dx]   # (Cin, Cout)
                    for dy in (0, 1) for dx in (0, 1)]
            ws.append(jnp.concatenate(taps, axis=0))             # (4*Cin, Cout)
    return jnp.stack(ws, axis=0)                                 # (4, 4*Cin, Cout)


def _reassemble(y, n, h, w, cout, r):
    # (4, R_pad, Cout_eff) phase-major -> (N, 2H, 2W, Cout) NHWC.
    # TODO(synk): write the phase-interleaved layout directly via the output
    # BlockSpec index_map to skip this small JAX-side transpose.
    y = y[:, :r, :cout].reshape(2, 2, n, h, w, cout)
    y = jnp.transpose(y, (2, 3, 0, 4, 1, 5))           # (N, H, ro, W, co, C)
    return y.reshape(n, 2 * h, 2 * w, cout)


# ------------------------------ layer wrappers -------------------------------

def linear_relu(x, w, b):
    bsz, kdim = x.shape
    fdim = w.shape[1]
    bp, fp = _round_up(bsz, 8), _round_up(fdim, 128)
    bm, tn = math.gcd(bp, 128), math.gcd(fp, 512)
    xp = jnp.pad(x, ((0, bp - bsz), (0, 0))).astype(jnp.bfloat16)
    wp = jnp.pad(w, ((0, 0), (0, fp - fdim))).astype(jnp.bfloat16)
    bpad = jnp.pad(b, (0, fp - fdim)).reshape(1, fp).astype(jnp.float32)
    out = pl.pallas_call(
        _linear_relu_kernel,
        grid=(bp // bm, fp // tn),
        in_specs=[
            pl.BlockSpec((bm, kdim), lambda i, j: (i, 0)),
            pl.BlockSpec((kdim, tn), lambda i, j: (0, j)),
            pl.BlockSpec((1, tn), lambda i, j: (0, j)),
        ],
        out_specs=pl.BlockSpec((bm, tn), lambda i, j: (i, j)),
        out_shape=jax.ShapeDtypeStruct((bp, fp), jnp.float32),
        compiler_params=_cparams("parallel", "parallel"),
    )(xp, wp, bpad)
    return out[:bsz, :fdim]


def convt_relu_bn(x_nhwc, wt, bias, gamma, beta):
    n, h, w, cin = x_nhwc.shape
    cout = wt.shape[1]
    k4 = 4 * cin
    a, r, r_pad, tm, t = _phase_im2col(x_nhwc)
    w_ph = _phase_weights(wt).astype(jnp.bfloat16)
    b2 = bias.reshape(1, cout).astype(jnp.float32)

    kernel = functools.partial(_convt_relu_stats_kernel, tm=tm, rows_valid=r)
    h_out, psum = pl.pallas_call(
        kernel,
        grid=(4, t),
        in_specs=[
            pl.BlockSpec((1, tm, k4), lambda ph, i: (ph, i, 0)),
            pl.BlockSpec((1, k4, cout), lambda ph, i: (ph, 0, 0)),
            pl.BlockSpec((1, cout), lambda ph, i: (0, 0)),
        ],
        out_specs=(
            pl.BlockSpec((1, tm, cout), lambda ph, i: (ph, i, 0)),
            pl.BlockSpec((1, 8, 2 * cout), lambda ph, i: (ph * t + i, 0, 0)),
        ),
        out_shape=(
            jax.ShapeDtypeStruct((4, r_pad, cout), jnp.float32),
            jax.ShapeDtypeStruct((4 * t, 8, 2 * cout), jnp.float32),
        ),
        compiler_params=_cparams("parallel", "parallel"),
    )(a, w_ph, b2)

    # finalize BatchNorm statistics from the tiny per-tile partial sums.
    s = jnp.sum(psum[:, 0, :], axis=0)                 # (2*Cout,)
    cnt = 4.0 * r                                      # = N * Ho * Wo
    mean = s[:cout] / cnt
    var = jnp.maximum(s[cout:] / cnt - mean * mean, 0.0)   # biased (training mode)
    inv = lax.rsqrt(var + EPS)
    scale = gamma * inv
    shift = beta - mean * scale

    y = pl.pallas_call(
        _bn_apply_kernel,
        grid=(4, t),
        in_specs=[
            pl.BlockSpec((1, tm, cout), lambda ph, i: (ph, i, 0)),
            pl.BlockSpec((1, cout), lambda ph, i: (0, 0)),
            pl.BlockSpec((1, cout), lambda ph, i: (0, 0)),
        ],
        out_specs=pl.BlockSpec((1, tm, cout), lambda ph, i: (ph, i, 0)),
        out_shape=jax.ShapeDtypeStruct((4, r_pad, cout), jnp.float32),
        compiler_params=_cparams("parallel", "parallel"),
    )(h_out, scale.reshape(1, cout).astype(jnp.float32),
      shift.reshape(1, cout).astype(jnp.float32))
    return _reassemble(y, n, h, w, cout, r)


def convt_sigmoid(x_nhwc, wt, bias):
    n, h, w, cin = x_nhwc.shape
    cout = wt.shape[1]
    k4 = 4 * cin
    cpad = _round_up(cout, 128)          # lane-dense output (sliced in wrapper)
    a, r, r_pad, tm, t = _phase_im2col(x_nhwc)
    w_ph = jnp.pad(_phase_weights(wt), ((0, 0), (0, 0), (0, cpad - cout)))
    w_ph = w_ph.astype(jnp.bfloat16)
    b2 = jnp.pad(bias, (0, cpad - cout)).reshape(1, cpad).astype(jnp.float32)

    out = pl.pallas_call(
        _convt_sigmoid_kernel,
        grid=(4, t),
        in_specs=[
            pl.BlockSpec((1, tm, k4), lambda ph, i: (ph, i, 0)),
            pl.BlockSpec((1, k4, cpad), lambda ph, i: (ph, 0, 0)),
            pl.BlockSpec((1, cpad), lambda ph, i: (0, 0)),
        ],
        out_specs=pl.BlockSpec((1, tm, cpad), lambda ph, i: (ph, i, 0)),
        out_shape=jax.ShapeDtypeStruct((4, r_pad, cpad), jnp.float32),
        compiler_params=_cparams("parallel", "parallel"),
    )(a, w_ph, b2)
    return _reassemble(out, n, h, w, cout, r)


def generator_forward_pallas(params, z, *, img_size, dim):
    f0, f1 = img_size[0] // 16, img_size[1] // 16
    h = linear_relu(z, params["lin_w"], params["lin_b"])      # Linear + ReLU
    b = z.shape[0]
    x = h.reshape(b, 8 * dim, f0, f1)                         # PyTorch .view (NCHW)
    x = jnp.transpose(x, (0, 2, 3, 1))                        # -> NHWC
    for i in range(3):
        L = params["conv"][i]
        x = convt_relu_bn(x, L["wt"], L["b"], L["gamma"], L["beta"])
    L = params["conv"][3]
    x = convt_sigmoid(x, L["wt"], L["b"])
    return jnp.transpose(x, (0, 3, 1, 2))                     # back to NCHW


# --------------------------- reference (pure JAX, f32) ---------------------------

def generator_forward_ref(params, z, *, img_size, dim):
    f0, f1 = img_size[0] // 16, img_size[1] // 16
    h = jnp.maximum(z @ params["lin_w"] + params["lin_b"], 0.0)
    x = h.reshape(z.shape[0], 8 * dim, f0, f1)
    for i in range(4):
        L = params["conv"][i]
        rhs = jnp.transpose(jnp.flip(L["wt"], (2, 3)), (1, 0, 2, 3))  # OIHW
        x = lax.conv_general_dilated(
            x, rhs, window_strides=(1, 1), padding=[(2, 2), (2, 2)],
            lhs_dilation=(2, 2), dimension_numbers=("NCHW", "OIHW", "NCHW"))
        x = x + L["b"].reshape(1, -1, 1, 1)
        if i < 3:
            x = jnp.maximum(x, 0.0)
            mean = x.mean(axis=(0, 2, 3), keepdims=True)
            var = ((x - mean) ** 2).mean(axis=(0, 2, 3), keepdims=True)
            x = (L["gamma"].reshape(1, -1, 1, 1) * (x - mean)
                 / jnp.sqrt(var + EPS) + L["beta"].reshape(1, -1, 1, 1))
        else:
            x = jax.nn.sigmoid(x)
    return x


# ------------------------------ parameter init ------------------------------

def init_params(key, img_size, latent_dim, dim):
    f0, f1 = img_size[0] // 16, img_size[1] // 16
    fdim = 8 * dim * f0 * f1
    keys = jax.random.split(key, 16)
    params = {
        "lin_w": 0.1 * jax.random.normal(keys[0], (latent_dim, fdim), jnp.float32),
        "lin_b": 0.1 * jax.random.normal(keys[1], (fdim,), jnp.float32),
        "conv": [],
    }
    chans = [8 * dim, 4 * dim, 2 * dim, dim, img_size[2]]
    for i in range(4):
        cin, cout = chans[i], chans[i + 1]
        layer = {
            "wt": 0.1 * jax.random.normal(keys[2 + 3 * i], (cin, cout, 4, 4),
                                          jnp.float32),
            "b": 0.1 * jax.random.normal(keys[3 + 3 * i], (cout,), jnp.float32),
        }
        if i < 3:
            kg = keys[4 + 3 * i]
            layer["gamma"] = 1.0 + 0.1 * jax.random.normal(kg, (cout,), jnp.float32)
            layer["beta"] = 0.1 * jax.random.normal(jax.random.fold_in(kg, 1),
                                                    (cout,), jnp.float32)
        params["conv"].append(layer)
    return params


# ----------------------------------- main -----------------------------------

if __name__ == "__main__":
    img_size = (32, 32, 1)    # (H, W, C_img) -> feature_sizes = (2, 2)
    latent_dim = 16
    dim = 16
    batch = 2

    key = jax.random.PRNGKey(0)
    params = init_params(key, img_size, latent_dim, dim)
    z = jax.random.normal(jax.random.fold_in(key, 1234), (batch, latent_dim),
                          jnp.float32)

    fwd = jax.jit(functools.partial(generator_forward_pallas,
                                    img_size=img_size, dim=dim))
    out = jax.block_until_ready(fwd(params, z))

    assert out.shape == (batch, img_size[2], img_size[0], img_size[1]), out.shape
    ref = generator_forward_ref(params, z, img_size=img_size, dim=dim)
    max_err = float(jnp.max(jnp.abs(out - ref)))
    # bf16 matmul inputs (f32 accumulation) vs a pure-f32 reference through
    # four conv+BatchNorm layers -> allow a slightly looser absolute tolerance.
    assert max_err < 2e-2, f"mismatch vs reference: {max_err}"
    print("KERNEL_OK")
</pallas_src>

<mosaic_0001>
module attributes {stable_mosaic.version = 11 : i64} {
  func.func @_linear_relu_kernel(%arg0: i32, %arg1: i32, %arg2: memref<8x16xbf16, #tpu.memory_space<vmem>>, %arg3: memref<16x512xbf16, #tpu.memory_space<vmem>>, %arg4: memref<1x512xf32, #tpu.memory_space<vmem>>, %arg5: memref<8x512xf32, #tpu.memory_space<vmem>>) attributes {dimension_semantics = [#tpu.dimension_semantics<parallel>, #tpu.dimension_semantics<parallel>], iteration_bounds = array<i64: 1, 1>, scalar_prefetch = 0 : i64, scratch_operands = 0 : i64, tpu.core_type = #tpu.core_type<tc>, window_params = [{transform_indices = @transform_0, window_bounds = array<i64: 8, 16>}, {transform_indices = @transform_1, window_bounds = array<i64: 16, 512>}, {transform_indices = @transform_2, window_bounds = array<i64: 1, 512>}, {transform_indices = @transform_3, window_bounds = array<i64: 8, 512>}]} {
    %c0 = arith.constant 0 : index
    %c0_0 = arith.constant 0 : index
    %0 = vector.load %arg2[%c0, %c0_0] : memref<8x16xbf16, #tpu.memory_space<vmem>>, vector<8x16xbf16>
    %c0_1 = arith.constant 0 : index
    %c0_2 = arith.constant 0 : index
    %1 = vector.load %arg3[%c0_1, %c0_2] : memref<16x512xbf16, #tpu.memory_space<vmem>>, vector<16x512xbf16>
    %cst = arith.constant dense<0.000000e+00> : vector<8x512xf32>
    %2 = tpu.matmul %0, %1, %cst {dimension_numbers = #tpu.dot_dimension_numbers<[1], [0], [0], [1], [0, 0, 1, 1], [], []>} : vector<8x16xbf16>, vector<16x512xbf16>, vector<8x512xf32> -> vector<8x512xf32>
    %c0_3 = arith.constant 0 : index
    %c0_4 = arith.constant 0 : index
    %3 = vector.load %arg4[%c0_3, %c0_4] : memref<1x512xf32, #tpu.memory_space<vmem>>, vector<1x512xf32>
    %4 = vector.broadcast %3 : vector<1x512xf32> to vector<8x512xf32>
    %5 = arith.addf %2, %4 : vector<8x512xf32>
    %cst_5 = arith.constant 0.000000e+00 : f32
    %6 = vector.broadcast %cst_5 : f32 to vector<8x512xf32>
    %7 = arith.maximumf %5, %6 : vector<8x512xf32>
    %c0_6 = arith.constant 0 : index
    %c0_7 = arith.constant 0 : index
    %8 = vector.load %arg5[%c0_6, %c0_7] : memref<8x512xf32, #tpu.memory_space<vmem>>, vector<8x512xf32>
    tpu.vector_store %arg5[%c0_6, %c0_7], %7 {strides = array<i32>} : memref<8x512xf32, #tpu.memory_space<vmem>>, vector<8x512xf32>,
    return
  }
  func.func @transform_0(%arg0: i32, %arg1: i32) -> (i32, i32) {
    %c0_i32 = arith.constant 0 : i32
    %c0_i32_0 = arith.constant 0 : i32
    return %arg0, %c0_i32 : i32, i32
  }
  func.func @transform_1(%arg0: i32, %arg1: i32) -> (i32, i32) {
    %c0_i32 = arith.constant 0 : i32
    %c0_i32_0 = arith.constant 0 : i32
    return %c0_i32, %arg1 : i32, i32
  }
  func.func @transform_2(%arg0: i32, %arg1: i32) -> (i32, i32) {
    %c0_i32 = arith.constant 0 : i32
    %c0_i32_0 = arith.constant 0 : i32
    return %c0_i32, %arg1 : i32, i32
  }
  func.func @transform_3(%arg0: i32, %arg1: i32) -> (i32, i32) {
    %c0_i32 = arith.constant 0 : i32
    return %arg0, %arg1 : i32, i32
  }
}

module attributes {stable_mosaic.version = 11 : i64} {
  func.func @_convt_relu_stats_kernel(%arg0: i32, %arg1: i32, %arg2: memref<1x8x512xbf16, #tpu.memory_space<vmem>>, %arg3: memref<1x512x64xbf16, #tpu.memory_space<vmem>>, %arg4: memref<1x64xf32, #tpu.memory_space<vmem>>, %arg5: memref<1x8x64xf32, #tpu.memory_space<vmem>>, %arg6: memref<1x8x128xf32, #tpu.memory_space<vmem>>) attributes {dimension_semantics = [#tpu.dimension_semantics<parallel>, #tpu.dimension_semantics<parallel>], iteration_bounds = array<i64: 4, 1>, scalar_prefetch = 0 : i64, scratch_operands = 0 : i64, tpu.core_type = #tpu.core_type<tc>, window_params = [{transform_indices = @transform_0, window_bounds = array<i64: 1, 8, 512>}, {transform_indices = @transform_1, window_bounds = array<i64: 1, 512, 64>}, {pipeline_mode = #tpu.pipeline_mode<synchronous>, transform_indices = @transform_2, window_bounds = array<i64: 1, 64>}, {transform_indices = @transform_3, window_bounds = array<i64: 1, 8, 64>}, {transform_indices = @transform_4, window_bounds = array<i64: 1, 8, 128>}]} {
    %c0 = arith.constant 0 : index
    %c0_0 = arith.constant 0 : index
    %c0_1 = arith.constant 0 : index
    %0 = vector.load %arg2[%c0, %c0_0, %c0_1] : memref<1x8x512xbf16, #tpu.memory_space<vmem>>, vector<1x8x512xbf16>
    %1 = vector.shape_cast %0 : vector<1x8x512xbf16> to vector<8x512xbf16>
    %c0_2 = arith.constant 0 : index
    %c0_3 = arith.constant 0 : index
    %c0_4 = arith.constant 0 : index
    %2 = vector.load %arg3[%c0_2, %c0_3, %c0_4] : memref<1x512x64xbf16, #tpu.memory_space<vmem>>, vector<1x512x64xbf16>
    %3 = vector.shape_cast %2 : vector<1x512x64xbf16> to vector<512x64xbf16>
    %cst = arith.constant dense<0.000000e+00> : vector<8x64xf32>
    %4 = tpu.matmul %1, %3, %cst {dimension_numbers = #tpu.dot_dimension_numbers<[1], [0], [0], [1], [0, 0, 1, 1], [], []>} : vector<8x512xbf16>, vector<512x64xbf16>, vector<8x64xf32> -> vector<8x64xf32>
    %c0_5 = arith.constant 0 : index
    %c0_6 = arith.constant 0 : index
    %5 = vector.load %arg4[%c0_5, %c0_6] : memref<1x64xf32, #tpu.memory_space<vmem>>, vector<1x64xf32>
    %6 = vector.broadcast %5 : vector<1x64xf32> to vector<8x64xf32>
    %7 = arith.addf %4, %6 : vector<8x64xf32>
    %cst_7 = arith.constant 0.000000e+00 : f32
    %8 = vector.broadcast %cst_7 : f32 to vector<8x64xf32>
    %9 = arith.maximumf %7, %8 : vector<8x64xf32>
    %c0_8 = arith.constant 0 : index
    %c0_9 = arith.constant 0 : index
    %c0_10 = arith.constant 0 : index
    %10 = vector.load %arg5[%c0_8, %c0_9, %c0_10] : memref<1x8x64xf32, #tpu.memory_space<vmem>>, vector<1x8x64xf32>
    %11 = vector.shape_cast %10 : vector<1x8x64xf32> to vector<8x64xf32>
    %12 = vector.shape_cast %9 : vector<8x64xf32> to vector<1x8x64xf32>
    tpu.vector_store %arg5[%c0_8, %c0_9, %c0_10], %12 {strides = array<i32>} : memref<1x8x64xf32, #tpu.memory_space<vmem>>, vector<1x8x64xf32>,
    %c8_i32 = arith.constant 8 : i32
    %13 = arith.muli %arg1, %c8_i32 : i32
    %14 = tpu.iota {dimensions = array<i32: 0>} : vector<8x1xi32>
    %15 = vector.broadcast %13 : i32 to vector<8x1xi32>
    %16 = arith.addi %15, %14 : vector<8x1xi32>
    %c8_i32_11 = arith.constant 8 : i32
    %17 = vector.broadcast %c8_i32_11 : i32 to vector<8x1xi32>
    %18 = arith.cmpi slt, %16, %17 : vector<8x1xi32>
    %19 = arith.extui %18 : vector<8x1xi1> to vector<8x1xi32>
    %20 = arith.sitofp %19 : vector<8x1xi32> to vector<8x1xf32>
    %21 = vector.broadcast %20 : vector<8x1xf32> to vector<8x64xf32>
    %22 = arith.mulf %9, %21 : vector<8x64xf32>
    %cst_12 = arith.constant dense<0.000000e+00> : vector<64xf32>
    %23 = vector.multi_reduction <add>, %22, %cst_12 [0] : vector<8x64xf32> to vector<64xf32>
    %24 = vector.shape_cast %23 : vector<64xf32> to vector<1x64xf32>
    %25 = arith.mulf %22, %9 : vector<8x64xf32>
    %cst_13 = arith.constant dense<0.000000e+00> : vector<64xf32>
    %26 = vector.multi_reduction <add>, %25, %cst_13 [0] : vector<8x64xf32> to vector<64xf32>
    %27 = vector.shape_cast %26 : vector<64xf32> to vector<1x64xf32>
    %28 = tpu.concatenate %24, %27 in 1 : vector<1x64xf32>, vector<1x64xf32> -> vector<1x128xf32>
    %29 = vector.shape_cast %28 : vector<1x128xf32> to vector<1x128xf32>
    %30 = vector.broadcast %29 : vector<1x128xf32> to vector<8x128xf32>
    %c0_14 = arith.constant 0 : index
    %c0_15 = arith.constant 0 : index
    %c0_16 = arith.constant 0 : index
    %31 = vector.load %arg6[%c0_14, %c0_15, %c0_16] : memref<1x8x128xf32, #tpu.memory_space<vmem>>, vector<1x8x128xf32>
    %32 = vector.shape_cast %31 : vector<1x8x128xf32> to vector<8x128xf32>
    %33 = vector.shape_cast %30 : vector<8x128xf32> to vector<1x8x128xf32>
    tpu.vector_store %arg6[%c0_14, %c0_15, %c0_16], %33 {strides = array<i32>} : memref<1x8x128xf32, #tpu.memory_space<vmem>>, vector<1x8x128xf32>,
    return
  }
  func.func @transform_0(%arg0: i32, %arg1: i32) -> (i32, i32, i32) {
    %c0_i32 = arith.constant 0 : i32
    %c0_i32_0 = arith.constant 0 : i32
    return %arg0, %arg1, %c0_i32 : i32, i32, i32
  }
  func.func @transform_1(%arg0: i32, %arg1: i32) -> (i32, i32, i32) {
    %c0_i32 = arith.constant 0 : i32
    %c0_i32_0 = arith.constant 0 : i32
    %c0_i32_1 = arith.constant 0 : i32
    return %arg0, %c0_i32, %c0_i32_0 : i32, i32, i32
  }
  func.func @transform_2(%arg0: i32, %arg1: i32) -> (i32, i32) {
    %c0_i32 = arith.constant 0 : i32
    %c0_i32_0 = arith.constant 0 : i32
    %c0_i32_1 = arith.constant 0 : i32
    return %c0_i32, %c0_i32_0 : i32, i32
  }
  func.func @transform_3(%arg0: i32, %arg1: i32) -> (i32, i32, i32) {
    %c0_i32 = arith.constant 0 : i32
    %c0_i32_0 = arith.constant 0 : i32
    return %arg0, %arg1, %c0_i32 : i32, i32, i32
  }
  func.func @transform_4(%arg0: i32, %arg1: i32) -> (i32, i32, i32) {
    %c1_i32 = arith.constant 1 : i32
    %0 = arith.muli %arg0, %c1_i32 : i32
    %1 = arith.addi %0, %arg1 : i32
    %c0_i32 = arith.constant 0 : i32
    %c0_i32_0 = arith.constant 0 : i32
    %c0_i32_1 = arith.constant 0 : i32
    return %1, %c0_i32, %c0_i32_0 : i32, i32, i32
  }
}

module attributes {stable_mosaic.version = 11 : i64} {
  func.func @_bn_apply_kernel(%arg0: i32, %arg1: i32, %arg2: memref<1x8x64xf32, #tpu.memory_space<vmem>>, %arg3: memref<1x64xf32, #tpu.memory_space<vmem>>, %arg4: memref<1x64xf32, #tpu.memory_space<vmem>>, %arg5: memref<1x8x64xf32, #tpu.memory_space<vmem>>) attributes {dimension_semantics = [#tpu.dimension_semantics<parallel>, #tpu.dimension_semantics<parallel>], iteration_bounds = array<i64: 4, 1>, scalar_prefetch = 0 : i64, scratch_operands = 0 : i64, tpu.core_type = #tpu.core_type<tc>, window_params = [{transform_indices = @transform_0, window_bounds = array<i64: 1, 8, 64>}, {pipeline_mode = #tpu.pipeline_mode<synchronous>, transform_indices = @transform_1, window_bounds = array<i64: 1, 64>}, {pipeline_mode = #tpu.pipeline_mode<synchronous>, transform_indices = @transform_2, window_bounds = array<i64: 1, 64>}, {transform_indices = @transform_3, window_bounds = array<i64: 1, 8, 64>}]} {
    %c0 = arith.constant 0 : index
    %c0_0 = arith.constant 0 : index
    %c0_1 = arith.constant 0 : index
    %0 = vector.load %arg2[%c0, %c0_0, %c0_1] : memref<1x8x64xf32, #tpu.memory_space<vmem>>, vector<1x8x64xf32>
    %1 = vector.shape_cast %0 : vector<1x8x64xf32> to vector<8x64xf32>
    %c0_2 = arith.constant 0 : index
    %c0_3 = arith.constant 0 : index
    %2 = vector.load %arg3[%c0_2, %c0_3] : memref<1x64xf32, #tpu.memory_space<vmem>>, vector<1x64xf32>
    %3 = vector.broadcast %2 : vector<1x64xf32> to vector<8x64xf32>
    %4 = arith.mulf %1, %3 : vector<8x64xf32>
    %c0_4 = arith.constant 0 : index
    %c0_5 = arith.constant 0 : index
    %5 = vector.load %arg4[%c0_4, %c0_5] : memref<1x64xf32, #tpu.memory_space<vmem>>, vector<1x64xf32>
    %6 = vector.broadcast %5 : vector<1x64xf32> to vector<8x64xf32>
    %7 = arith.addf %4, %6 : vector<8x64xf32>
    %c0_6 = arith.constant 0 : index
    %c0_7 = arith.constant 0 : index
    %c0_8 = arith.constant 0 : index
    %8 = vector.load %arg5[%c0_6, %c0_7, %c0_8] : memref<1x8x64xf32, #tpu.memory_space<vmem>>, vector<1x8x64xf32>
    %9 = vector.shape_cast %8 : vector<1x8x64xf32> to vector<8x64xf32>
    %10 = vector.shape_cast %7 : vector<8x64xf32> to vector<1x8x64xf32>
    tpu.vector_store %arg5[%c0_6, %c0_7, %c0_8], %10 {strides = array<i32>} : memref<1x8x64xf32, #tpu.memory_space<vmem>>, vector<1x8x64xf32>,
    return
  }
  func.func @transform_0(%arg0: i32, %arg1: i32) -> (i32, i32, i32) {
    %c0_i32 = arith.constant 0 : i32
    %c0_i32_0 = arith.constant 0 : i32
    return %arg0, %arg1, %c0_i32 : i32, i32, i32
  }
  func.func @transform_1(%arg0: i32, %arg1: i32) -> (i32, i32) {
    %c0_i32 = arith.constant 0 : i32
    %c0_i32_0 = arith.constant 0 : i32
    %c0_i32_1 = arith.constant 0 : i32
    return %c0_i32, %c0_i32_0 : i32, i32
  }
  func.func @transform_2(%arg0: i32, %arg1: i32) -> (i32, i32) {
    %c0_i32 = arith.constant 0 : i32
    %c0_i32_0 = arith.constant 0 : i32
    %c0_i32_1 = arith.constant 0 : i32
    return %c0_i32, %c0_i32_0 : i32, i32
  }
  func.func @transform_3(%arg0: i32, %arg1: i32) -> (i32, i32, i32) {
    %c0_i32 = arith.constant 0 : i32
    %c0_i32_0 = arith.constant 0 : i32
    return %arg0, %arg1, %c0_i32 : i32, i32, i32
  }
}

module attributes {stable_mosaic.version = 11 : i64} {
  func.func @_bn_apply_kernel(%arg0: i32, %arg1: i32, %arg2: memref<1x32x32xf32, #tpu.memory_space<vmem>>, %arg3: memref<1x32xf32, #tpu.memory_space<vmem>>, %arg4: memref<1x32xf32, #tpu.memory_space<vmem>>, %arg5: memref<1x32x32xf32, #tpu.memory_space<vmem>>) attributes {dimension_semantics = [#tpu.dimension_semantics<parallel>, #tpu.dimension_semantics<parallel>], iteration_bounds = array<i64: 4, 1>, scalar_prefetch = 0 : i64, scratch_operands = 0 : i64, tpu.core_type = #tpu.core_type<tc>, window_params = [{transform_indices = @transform_0, window_bounds = array<i64: 1, 32, 32>}, {pipeline_mode = #tpu.pipeline_mode<synchronous>, transform_indices = @transform_1, window_bounds = array<i64: 1, 32>}, {pipeline_mode = #tpu.pipeline_mode<synchronous>, transform_indices = @transform_2, window_bounds = array<i64: 1, 32>}, {transform_indices = @transform_3, window_bounds = array<i64: 1, 32, 32>}]} {
    %c0 = arith.constant 0 : index
    %c0_0 = arith.constant 0 : index
    %c0_1 = arith.constant 0 : index
    %0 = vector.load %arg2[%c0, %c0_0, %c0_1] : memref<1x32x32xf32, #tpu.memory_space<vmem>>, vector<1x32x32xf32>
    %1 = vector.shape_cast %0 : vector<1x32x32xf32> to vector<32x32xf32>
    %c0_2 = arith.constant 0 : index
    %c0_3 = arith.constant 0 : index
    %2 = vector.load %arg3[%c0_2, %c0_3] : memref<1x32xf32, #tpu.memory_space<vmem>>, vector<1x32xf32>
    %3 = vector.broadcast %2 : vector<1x32xf32> to vector<32x32xf32>
    %4 = arith.mulf %1, %3 : vector<32x32xf32>
    %c0_4 = arith.constant 0 : index
    %c0_5 = arith.constant 0 : index
    %5 = vector.load %arg4[%c0_4, %c0_5] : memref<1x32xf32, #tpu.memory_space<vmem>>, vector<1x32xf32>
    %6 = vector.broadcast %5 : vector<1x32xf32> to vector<32x32xf32>
    %7 = arith.addf %4, %6 : vector<32x32xf32>
    %c0_6 = arith.constant 0 : index
    %c0_7 = arith.constant 0 : index
    %c0_8 = arith.constant 0 : index
    %8 = vector.load %arg5[%c0_6, %c0_7, %c0_8] : memref<1x32x32xf32, #tpu.memory_space<vmem>>, vector<1x32x32xf32>
    %9 = vector.shape_cast %8 : vector<1x32x32xf32> to vector<32x32xf32>
    %10 = vector.shape_cast %7 : vector<32x32xf32> to vector<1x32x32xf32>
    tpu.vector_store %arg5[%c0_6, %c0_7, %c0_8], %10 {strides = array<i32>} : memref<1x32x32xf32, #tpu.memory_space<vmem>>, vector<1x32x32xf32>,
    return
  }
  func.func @transform_0(%arg0: i32, %arg1: i32) -> (i32, i32, i32) {
    %c0_i32 = arith.constant 0 : i32
    %c0_i32_0 = arith.constant 0 : i32
    return %arg0, %arg1, %c0_i32 : i32, i32, i32
  }
  func.func @transform_1(%arg0: i32, %arg1: i32) -> (i32, i32) {
    %c0_i32 = arith.constant 0 : i32
    %c0_i32_0 = arith.constant 0 : i32
    %c0_i32_1 = arith.constant 0 : i32
    return %c0_i32, %c0_i32_0 : i32, i32
  }
  func.func @transform_2(%arg0: i32, %arg1: i32) -> (i32, i32) {
    %c0_i32 = arith.constant 0 : i32
    %c0_i32_0 = arith.constant 0 : i32
    %c0_i32_1 = arith.constant 0 : i32
    return %c0_i32, %c0_i32_0 : i32, i32
  }
  func.func @transform_3(%arg0: i32, %arg1: i32) -> (i32, i32, i32) {
    %c0_i32 = arith.constant 0 : i32
    %c0_i32_0 = arith.constant 0 : i32
    return %arg0, %arg1, %c0_i32 : i32, i32, i32
  }
}

module attributes {stable_mosaic.version = 11 : i64} {
  func.func @_convt_relu_stats_kernel(%arg0: i32, %arg1: i32, %arg2: memref<1x32x256xbf16, #tpu.memory_space<vmem>>, %arg3: memref<1x256x32xbf16, #tpu.memory_space<vmem>>, %arg4: memref<1x32xf32, #tpu.memory_space<vmem>>, %arg5: memref<1x32x32xf32, #tpu.memory_space<vmem>>, %arg6: memref<1x8x64xf32, #tpu.memory_space<vmem>>) attributes {dimension_semantics = [#tpu.dimension_semantics<parallel>, #tpu.dimension_semantics<parallel>], iteration_bounds = array<i64: 4, 1>, scalar_prefetch = 0 : i64, scratch_operands = 0 : i64, tpu.core_type = #tpu.core_type<tc>, window_params = [{transform_indices = @transform_0, window_bounds = array<i64: 1, 32, 256>}, {transform_indices = @transform_1, window_bounds = array<i64: 1, 256, 32>}, {pipeline_mode = #tpu.pipeline_mode<synchronous>, transform_indices = @transform_2, window_bounds = array<i64: 1, 32>}, {transform_indices = @transform_3, window_bounds = array<i64: 1, 32, 32>}, {transform_indices = @transform_4, window_bounds = array<i64: 1, 8, 64>}]} {
    %c0 = arith.constant 0 : index
    %c0_0 = arith.constant 0 : index
    %c0_1 = arith.constant 0 : index
    %0 = vector.load %arg2[%c0, %c0_0, %c0_1] : memref<1x32x256xbf16, #tpu.memory_space<vmem>>, vector<1x32x256xbf16>
    %1 = vector.shape_cast %0 : vector<1x32x256xbf16> to vector<32x256xbf16>
    %c0_2 = arith.constant 0 : index
    %c0_3 = arith.constant 0 : index
    %c0_4 = arith.constant 0 : index
    %2 = vector.load %arg3[%c0_2, %c0_3, %c0_4] : memref<1x256x32xbf16, #tpu.memory_space<vmem>>, vector<1x256x32xbf16>
    %3 = vector.shape_cast %2 : vector<1x256x32xbf16> to vector<256x32xbf16>
    %cst = arith.constant dense<0.000000e+00> : vector<32x32xf32>
    %4 = tpu.matmul %1, %3, %cst {dimension_numbers = #tpu.dot_dimension_numbers<[1], [0], [0], [1], [0, 0, 1, 1], [], []>} : vector<32x256xbf16>, vector<256x32xbf16>, vector<32x32xf32> -> vector<32x32xf32>
    %c0_5 = arith.constant 0 : index
    %c0_6 = arith.constant 0 : index
    %5 = vector.load %arg4[%c0_5, %c0_6] : memref<1x32xf32, #tpu.memory_space<vmem>>, vector<1x32xf32>
    %6 = vector.broadcast %5 : vector<1x32xf32> to vector<32x32xf32>
    %7 = arith.addf %4, %6 : vector<32x32xf32>
    %cst_7 = arith.constant 0.000000e+00 : f32
    %8 = vector.broadcast %cst_7 : f32 to vector<32x32xf32>
    %9 = arith.maximumf %7, %8 : vector<32x32xf32>
    %c0_8 = arith.constant 0 : index
    %c0_9 = arith.constant 0 : index
    %c0_10 = arith.constant 0 : index
    %10 = vector.load %arg5[%c0_8, %c0_9, %c0_10] : memref<1x32x32xf32, #tpu.memory_space<vmem>>, vector<1x32x32xf32>
    %11 = vector.shape_cast %10 : vector<1x32x32xf32> to vector<32x32xf32>
    %12 = vector.shape_cast %9 : vector<32x32xf32> to vector<1x32x32xf32>
    tpu.vector_store %arg5[%c0_8, %c0_9, %c0_10], %12 {strides = array<i32>} : memref<1x32x32xf32, #tpu.memory_space<vmem>>, vector<1x32x32xf32>,
    %c32_i32 = arith.constant 32 : i32
    %13 = arith.muli %arg1, %c32_i32 : i32
    %14 = tpu.iota {dimensions = array<i32: 0>} : vector<32x1xi32>
    %15 = vector.broadcast %13 : i32 to vector<32x1xi32>
    %16 = arith.addi %15, %14 : vector<32x1xi32>
    %c32_i32_11 = arith.constant 32 : i32
    %17 = vector.broadcast %c32_i32_11 : i32 to vector<32x1xi32>
    %18 = arith.cmpi slt, %16, %17 : vector<32x1xi32>
    %19 = arith.extui %18 : vector<32x1xi1> to vector<32x1xi32>
    %20 = arith.sitofp %19 : vector<32x1xi32> to vector<32x1xf32>
    %21 = vector.broadcast %20 : vector<32x1xf32> to vector<32x32xf32>
    %22 = arith.mulf %9, %21 : vector<32x32xf32>
    %cst_12 = arith.constant dense<0.000000e+00> : vector<32xf32>
    %23 = vector.multi_reduction <add>, %22, %cst_12 [0] : vector<32x32xf32> to vector<32xf32>
    %24 = vector.shape_cast %23 : vector<32xf32> to vector<1x32xf32>
    %25 = arith.mulf %22, %9 : vector<32x32xf32>
    %cst_13 = arith.constant dense<0.000000e+00> : vector<32xf32>
    %26 = vector.multi_reduction <add>, %25, %cst_13 [0] : vector<32x32xf32> to vector<32xf32>
    %27 = vector.shape_cast %26 : vector<32xf32> to vector<1x32xf32>
    %28 = tpu.concatenate %24, %27 in 1 : vector<1x32xf32>, vector<1x32xf32> -> vector<1x64xf32>
    %29 = vector.shape_cast %28 : vector<1x64xf32> to vector<1x64xf32>
    %30 = vector.broadcast %29 : vector<1x64xf32> to vector<8x64xf32>
    %c0_14 = arith.constant 0 : index
    %c0_15 = arith.constant 0 : index
    %c0_16 = arith.constant 0 : index
    %31 = vector.load %arg6[%c0_14, %c0_15, %c0_16] : memref<1x8x64xf32, #tpu.memory_space<vmem>>, vector<1x8x64xf32>
    %32 = vector.shape_cast %31 : vector<1x8x64xf32> to vector<8x64xf32>
    %33 = vector.shape_cast %30 : vector<8x64xf32> to vector<1x8x64xf32>
    tpu.vector_store %arg6[%c0_14, %c0_15, %c0_16], %33 {strides = array<i32>} : memref<1x8x64xf32, #tpu.memory_space<vmem>>, vector<1x8x64xf32>,
    return
  }
  func.func @transform_0(%arg0: i32, %arg1: i32) -> (i32, i32, i32) {
    %c0_i32 = arith.constant 0 : i32
    %c0_i32_0 = arith.constant 0 : i32
    return %arg0, %arg1, %c0_i32 : i32, i32, i32
  }
  func.func @transform_1(%arg0: i32, %arg1: i32) -> (i32, i32, i32) {
    %c0_i32 = arith.constant 0 : i32
    %c0_i32_0 = arith.constant 0 : i32
    %c0_i32_1 = arith.constant 0 : i32
    return %arg0, %c0_i32, %c0_i32_0 : i32, i32, i32
  }
  func.func @transform_2(%arg0: i32, %arg1: i32) -> (i32, i32) {
    %c0_i32 = arith.constant 0 : i32
    %c0_i32_0 = arith.constant 0 : i32
    %c0_i32_1 = arith.constant 0 : i32
    return %c0_i32, %c0_i32_0 : i32, i32
  }
  func.func @transform_3(%arg0: i32, %arg1: i32) -> (i32, i32, i32) {
    %c0_i32 = arith.constant 0 : i32
    %c0_i32_0 = arith.constant 0 : i32
    return %arg0, %arg1, %c0_i32 : i32, i32, i32
  }
  func.func @transform_4(%arg0: i32, %arg1: i32) -> (i32, i32, i32) {
    %c1_i32 = arith.constant 1 : i32
    %0 = arith.muli %arg0, %c1_i32 : i32
    %1 = arith.addi %0, %arg1 : i32
    %c0_i32 = arith.constant 0 : i32
    %c0_i32_0 = arith.constant 0 : i32
    %c0_i32_1 = arith.constant 0 : i32
    return %1, %c0_i32, %c0_i32_0 : i32, i32, i32
  }
}

module attributes {stable_mosaic.version = 11 : i64} {
  func.func @_convt_relu_stats_kernel(%arg0: i32, %arg1: i32, %arg2: memref<1x128x128xbf16, #tpu.memory_space<vmem>>, %arg3: memref<1x128x16xbf16, #tpu.memory_space<vmem>>, %arg4: memref<1x16xf32, #tpu.memory_space<vmem>>, %arg5: memref<1x128x16xf32, #tpu.memory_space<vmem>>, %arg6: memref<1x8x32xf32, #tpu.memory_space<vmem>>) attributes {dimension_semantics = [#tpu.dimension_semantics<parallel>, #tpu.dimension_semantics<parallel>], iteration_bounds = array<i64: 4, 1>, scalar_prefetch = 0 : i64, scratch_operands = 0 : i64, tpu.core_type = #tpu.core_type<tc>, window_params = [{transform_indices = @transform_0, window_bounds = array<i64: 1, 128, 128>}, {transform_indices = @transform_1, window_bounds = array<i64: 1, 128, 16>}, {pipeline_mode = #tpu.pipeline_mode<synchronous>, transform_indices = @transform_2, window_bounds = array<i64: 1, 16>}, {transform_indices = @transform_3, window_bounds = array<i64: 1, 128, 16>}, {transform_indices = @transform_4, window_bounds = array<i64: 1, 8, 32>}]} {
    %c0 = arith.constant 0 : index
    %c0_0 = arith.constant 0 : index
    %c0_1 = arith.constant 0 : index
    %0 = vector.load %arg2[%c0, %c0_0, %c0_1] : memref<1x128x128xbf16, #tpu.memory_space<vmem>>, vector<1x128x128xbf16>
    %1 = vector.shape_cast %0 : vector<1x128x128xbf16> to vector<128x128xbf16>
    %c0_2 = arith.constant 0 : index
    %c0_3 = arith.constant 0 : index
    %c0_4 = arith.constant 0 : index
    %2 = vector.load %arg3[%c0_2, %c0_3, %c0_4] : memref<1x128x16xbf16, #tpu.memory_space<vmem>>, vector<1x128x16xbf16>
    %3 = vector.shape_cast %2 : vector<1x128x16xbf16> to vector<128x16xbf16>
    %cst = arith.constant dense<0.000000e+00> : vector<128x16xf32>
    %4 = tpu.matmul %1, %3, %cst {dimension_numbers = #tpu.dot_dimension_numbers<[1], [0], [0], [1], [0, 0, 1, 1], [], []>} : vector<128x128xbf16>, vector<128x16xbf16>, vector<128x16xf32> -> vector<128x16xf32>
    %c0_5 = arith.constant 0 : index
    %c0_6 = arith.constant 0 : index
    %5 = vector.load %arg4[%c0_5, %c0_6] : memref<1x16xf32, #tpu.memory_space<vmem>>, vector<1x16xf32>
    %6 = vector.broadcast %5 : vector<1x16xf32> to vector<128x16xf32>
    %7 = arith.addf %4, %6 : vector<128x16xf32>
    %cst_7 = arith.constant 0.000000e+00 : f32
    %8 = vector.broadcast %cst_7 : f32 to vector<128x16xf32>
    %9 = arith.maximumf %7, %8 : vector<128x16xf32>
    %c0_8 = arith.constant 0 : index
    %c0_9 = arith.constant 0 : index
    %c0_10 = arith.constant 0 : index
    %10 = vector.load %arg5[%c0_8, %c0_9, %c0_10] : memref<1x128x16xf32, #tpu.memory_space<vmem>>, vector<1x128x16xf32>
    %11 = vector.shape_cast %10 : vector<1x128x16xf32> to vector<128x16xf32>
    %12 = vector.shape_cast %9 : vector<128x16xf32> to vector<1x128x16xf32>
    tpu.vector_store %arg5[%c0_8, %c0_9, %c0_10], %12 {strides = array<i32>} : memref<1x128x16xf32, #tpu.memory_space<vmem>>, vector<1x128x16xf32>,
    %c128_i32 = arith.constant 128 : i32
    %13 = arith.muli %arg1, %c128_i32 : i32
    %14 = tpu.iota {dimensions = array<i32: 0>} : vector<128x1xi32>
    %15 = vector.broadcast %13 : i32 to vector<128x1xi32>
    %16 = arith.addi %15, %14 : vector<128x1xi32>
    %c128_i32_11 = arith.constant 128 : i32
    %17 = vector.broadcast %c128_i32_11 : i32 to vector<128x1xi32>
    %18 = arith.cmpi slt, %16, %17 : vector<128x1xi32>
    %19 = arith.extui %18 : vector<128x1xi1> to vector<128x1xi32>
    %20 = arith.sitofp %19 : vector<128x1xi32> to vector<128x1xf32>
    %21 = vector.broadcast %20 : vector<128x1xf32> to vector<128x16xf32>
    %22 = arith.mulf %9, %21 : vector<128x16xf32>
    %cst_12 = arith.constant dense<0.000000e+00> : vector<16xf32>
    %23 = vector.multi_reduction <add>, %22, %cst_12 [0] : vector<128x16xf32> to vector<16xf32>
    %24 = vector.shape_cast %23 : vector<16xf32> to vector<1x16xf32>
    %25 = arith.mulf %22, %9 : vector<128x16xf32>
    %cst_13 = arith.constant dense<0.000000e+00> : vector<16xf32>
    %26 = vector.multi_reduction <add>, %25, %cst_13 [0] : vector<128x16xf32> to vector<16xf32>
    %27 = vector.shape_cast %26 : vector<16xf32> to vector<1x16xf32>
    %28 = tpu.concatenate %24, %27 in 1 : vector<1x16xf32>, vector<1x16xf32> -> vector<1x32xf32>
    %29 = vector.shape_cast %28 : vector<1x32xf32> to vector<1x32xf32>
    %30 = vector.broadcast %29 : vector<1x32xf32> to vector<8x32xf32>
    %c0_14 = arith.constant 0 : index
    %c0_15 = arith.constant 0 : index
    %c0_16 = arith.constant 0 : index
    %31 = vector.load %arg6[%c0_14, %c0_15, %c0_16] : memref<1x8x32xf32, #tpu.memory_space<vmem>>, vector<1x8x32xf32>
    %32 = vector.shape_cast %31 : vector<1x8x32xf32> to vector<8x32xf32>
    %33 = vector.shape_cast %30 : vector<8x32xf32> to vector<1x8x32xf32>
    tpu.vector_store %arg6[%c0_14, %c0_15, %c0_16], %33 {strides = array<i32>} : memref<1x8x32xf32, #tpu.memory_space<vmem>>, vector<1x8x32xf32>,
    return
  }
  func.func @transform_0(%arg0: i32, %arg1: i32) -> (i32, i32, i32) {
    %c0_i32 = arith.constant 0 : i32
    %c0_i32_0 = arith.constant 0 : i32
    return %arg0, %arg1, %c0_i32 : i32, i32, i32
  }
  func.func @transform_1(%arg0: i32, %arg1: i32) -> (i32, i32, i32) {
    %c0_i32 = arith.constant 0 : i32
    %c0_i32_0 = arith.constant 0 : i32
    %c0_i32_1 = arith.constant 0 : i32
    return %arg0, %c0_i32, %c0_i32_0 : i32, i32, i32
  }
  func.func @transform_2(%arg0: i32, %arg1: i32) -> (i32, i32) {
    %c0_i32 = arith.constant 0 : i32
    %c0_i32_0 = arith.constant 0 : i32
    %c0_i32_1 = arith.constant 0 : i32
    return %c0_i32, %c0_i32_0 : i32, i32
  }
  func.func @transform_3(%arg0: i32, %arg1: i32) -> (i32, i32, i32) {
    %c0_i32 = arith.constant 0 : i32
    %c0_i32_0 = arith.constant 0 : i32
    return %arg0, %arg1, %c0_i32 : i32, i32, i32
  }
  func.func @transform_4(%arg0: i32, %arg1: i32) -> (i32, i32, i32) {
    %c1_i32 = arith.constant 1 : i32
    %0 = arith.muli %arg0, %c1_i32 : i32
    %1 = arith.addi %0, %arg1 : i32
    %c0_i32 = arith.constant 0 : i32
    %c0_i32_0 = arith.constant 0 : i32
    %c0_i32_1 = arith.constant 0 : i32
    return %1, %c0_i32, %c0_i32_0 : i32, i32, i32
  }
}

module attributes {stable_mosaic.version = 11 : i64} {
  func.func @_bn_apply_kernel(%arg0: i32, %arg1: i32, %arg2: memref<1x128x16xf32, #tpu.memory_space<vmem>>, %arg3: memref<1x16xf32, #tpu.memory_space<vmem>>, %arg4: memref<1x16xf32, #tpu.memory_space<vmem>>, %arg5: memref<1x128x16xf32, #tpu.memory_space<vmem>>) attributes {dimension_semantics = [#tpu.dimension_semantics<parallel>, #tpu.dimension_semantics<parallel>], iteration_bounds = array<i64: 4, 1>, scalar_prefetch = 0 : i64, scratch_operands = 0 : i64, tpu.core_type = #tpu.core_type<tc>, window_params = [{transform_indices = @transform_0, window_bounds = array<i64: 1, 128, 16>}, {pipeline_mode = #tpu.pipeline_mode<synchronous>, transform_indices = @transform_1, window_bounds = array<i64: 1, 16>}, {pipeline_mode = #tpu.pipeline_mode<synchronous>, transform_indices = @transform_2, window_bounds = array<i64: 1, 16>}, {transform_indices = @transform_3, window_bounds = array<i64: 1, 128, 16>}]} {
    %c0 = arith.constant 0 : index
    %c0_0 = arith.constant 0 : index
    %c0_1 = arith.constant 0 : index
    %0 = vector.load %arg2[%c0, %c0_0, %c0_1] : memref<1x128x16xf32, #tpu.memory_space<vmem>>, vector<1x128x16xf32>
    %1 = vector.shape_cast %0 : vector<1x128x16xf32> to vector<128x16xf32>
    %c0_2 = arith.constant 0 : index
    %c0_3 = arith.constant 0 : index
    %2 = vector.load %arg3[%c0_2, %c0_3] : memref<1x16xf32, #tpu.memory_space<vmem>>, vector<1x16xf32>
    %3 = vector.broadcast %2 : vector<1x16xf32> to vector<128x16xf32>
    %4 = arith.mulf %1, %3 : vector<128x16xf32>
    %c0_4 = arith.constant 0 : index
    %c0_5 = arith.constant 0 : index
    %5 = vector.load %arg4[%c0_4, %c0_5] : memref<1x16xf32, #tpu.memory_space<vmem>>, vector<1x16xf32>
    %6 = vector.broadcast %5 : vector<1x16xf32> to vector<128x16xf32>
    %7 = arith.addf %4, %6 : vector<128x16xf32>
    %c0_6 = arith.constant 0 : index
    %c0_7 = arith.constant 0 : index
    %c0_8 = arith.constant 0 : index
    %8 = vector.load %arg5[%c0_6, %c0_7, %c0_8] : memref<1x128x16xf32, #tpu.memory_space<vmem>>, vector<1x128x16xf32>
    %9 = vector.shape_cast %8 : vector<1x128x16xf32> to vector<128x16xf32>
    %10 = vector.shape_cast %7 : vector<128x16xf32> to vector<1x128x16xf32>
    tpu.vector_store %arg5[%c0_6, %c0_7, %c0_8], %10 {strides = array<i32>} : memref<1x128x16xf32, #tpu.memory_space<vmem>>, vector<1x128x16xf32>,
    return
  }
  func.func @transform_0(%arg0: i32, %arg1: i32) -> (i32, i32, i32) {
    %c0_i32 = arith.constant 0 : i32
    %c0_i32_0 = arith.constant 0 : i32
    return %arg0, %arg1, %c0_i32 : i32, i32, i32
  }
  func.func @transform_1(%arg0: i32, %arg1: i32) -> (i32, i32) {
    %c0_i32 = arith.constant 0 : i32
    %c0_i32_0 = arith.constant 0 : i32
    %c0_i32_1 = arith.constant 0 : i32
    return %c0_i32, %c0_i32_0 : i32, i32
  }
  func.func @transform_2(%arg0: i32, %arg1: i32) -> (i32, i32) {
    %c0_i32 = arith.constant 0 : i32
    %c0_i32_0 = arith.constant 0 : i32
    %c0_i32_1 = arith.constant 0 : i32
    return %c0_i32, %c0_i32_0 : i32, i32
  }
  func.func @transform_3(%arg0: i32, %arg1: i32) -> (i32, i32, i32) {
    %c0_i32 = arith.constant 0 : i32
    %c0_i32_0 = arith.constant 0 : i32
    return %arg0, %arg1, %c0_i32 : i32, i32, i32
  }
}

module attributes {stable_mosaic.version = 11 : i64} {
  func.func @_convt_sigmoid_kernel(%arg0: i32, %arg1: i32, %arg2: memref<1x256x64xbf16, #tpu.memory_space<vmem>>, %arg3: memref<1x64x128xbf16, #tpu.memory_space<vmem>>, %arg4: memref<1x128xf32, #tpu.memory_space<vmem>>, %arg5: memref<1x256x128xf32, #tpu.memory_space<vmem>>) attributes {dimension_semantics = [#tpu.dimension_semantics<parallel>, #tpu.dimension_semantics<parallel>], iteration_bounds = array<i64: 4, 2>, scalar_prefetch = 0 : i64, scratch_operands = 0 : i64, tpu.core_type = #tpu.core_type<tc>, window_params = [{transform_indices = @transform_0, window_bounds = array<i64: 1, 256, 64>}, {transform_indices = @transform_1, window_bounds = array<i64: 1, 64, 128>}, {pipeline_mode = #tpu.pipeline_mode<synchronous>, transform_indices = @transform_2, window_bounds = array<i64: 1, 128>}, {transform_indices = @transform_3, window_bounds = array<i64: 1, 256, 128>}]} {
    %c0 = arith.constant 0 : index
    %c0_0 = arith.constant 0 : index
    %c0_1 = arith.constant 0 : index
    %0 = vector.load %arg2[%c0, %c0_0, %c0_1] : memref<1x256x64xbf16, #tpu.memory_space<vmem>>, vector<1x256x64xbf16>
    %1 = vector.shape_cast %0 : vector<1x256x64xbf16> to vector<256x64xbf16>
    %c0_2 = arith.constant 0 : index
    %c0_3 = arith.constant 0 : index
    %c0_4 = arith.constant 0 : index
    %2 = vector.load %arg3[%c0_2, %c0_3, %c0_4] : memref<1x64x128xbf16, #tpu.memory_space<vmem>>, vector<1x64x128xbf16>
    %3 = vector.shape_cast %2 : vector<1x64x128xbf16> to vector<64x128xbf16>
    %cst = arith.constant dense<0.000000e+00> : vector<256x128xf32>
    %4 = tpu.matmul %1, %3, %cst {dimension_numbers = #tpu.dot_dimension_numbers<[1], [0], [0], [1], [0, 0, 1, 1], [], []>} : vector<256x64xbf16>, vector<64x128xbf16>, vector<256x128xf32> -> vector<256x128xf32>
    %c0_5 = arith.constant 0 : index
    %c0_6 = arith.constant 0 : index
    %5 = vector.load %arg4[%c0_5, %c0_6] : memref<1x128xf32, #tpu.memory_space<vmem>>, vector<1x128xf32>
    %6 = vector.broadcast %5 : vector<1x128xf32> to vector<256x128xf32>
    %7 = arith.addf %4, %6 : vector<256x128xf32>
    %cst_7 = arith.constant 0.000000e+00 : f32
    %8 = vector.broadcast %cst_7 : f32 to vector<256x128xf32>
    %9 = arith.subf %8, %7 : vector<256x128xf32>
    %10 = math.exp %9 : vector<256x128xf32>
    %cst_8 = arith.constant 1.000000e+00 : f32
    %11 = vector.broadcast %cst_8 : f32 to vector<256x128xf32>
    %12 = arith.addf %11, %10 : vector<256x128xf32>
    %13 = tpu.reciprocal %12 {approx = true} : vector<256x128xf32> -> vector<256x128xf32>
    %c0_9 = arith.constant 0 : index
    %c0_10 = arith.constant 0 : index
    %c0_11 = arith.constant 0 : index
    %14 = vector.load %arg5[%c0_9, %c0_10, %c0_11] : memref<1x256x128xf32, #tpu.memory_space<vmem>>, vector<1x256x128xf32>
    %15 = vector.shape_cast %14 : vector<1x256x128xf32> to vector<256x128xf32>
    %16 = vector.shape_cast %13 : vector<256x128xf32> to vector<1x256x128xf32>
    tpu.vector_store %arg5[%c0_9, %c0_10, %c0_11], %16 {strides = array<i32>} : memref<1x256x128xf32, #tpu.memory_space<vmem>>, vector<1x256x128xf32>,
    return
  }
  func.func @transform_0(%arg0: i32, %arg1: i32) -> (i32, i32, i32) {
    %c0_i32 = arith.constant 0 : i32
    %c0_i32_0 = arith.constant 0 : i32
    return %arg0, %arg1, %c0_i32 : i32, i32, i32
  }
  func.func @transform_1(%arg0: i32, %arg1: i32) -> (i32, i32, i32) {
    %c0_i32 = arith.constant 0 : i32
    %c0_i32_0 = arith.constant 0 : i32
    %c0_i32_1 = arith.constant 0 : i32
    return %arg0, %c0_i32, %c0_i32_0 : i32, i32, i32
  }
  func.func @transform_2(%arg0: i32, %arg1: i32) -> (i32, i32) {
    %c0_i32 = arith.constant 0 : i32
    %c0_i32_0 = arith.constant 0 : i32
    %c0_i32_1 = arith.constant 0 : i32
    return %c0_i32, %c0_i32_0 : i32, i32
  }
  func.func @transform_3(%arg0: i32, %arg1: i32) -> (i32, i32, i32) {
    %c0_i32 = arith.constant 0 : i32
    %c0_i32_0 = arith.constant 0 : i32
    return %arg0, %arg1, %c0_i32 : i32, i32, i32
  }
}

</mosaic_0001>

<bundles_post_ra>
// kernel: generator_forward_pallas.8
= control target key start
LH: loop header
LB: loop body
LE: loop exit
PB: predicated region body
PF: predicated region fallthrough
CT: control target
= control target key end

     0   :  { %v173_v1 = vmov 0   ;;  %vm62_vm0 = vcmask 130048   ;;  %v22_v6 = vlaneseq  ;;  %s224_s1 = inlined_call_operand.vmem [shape: bf16[16,512], index: 1, kind: input, shape index: {}]   ;;  %s225_s0 = inlined_call_operand.vmem [shape: bf16[8,16], index: 0, kind: input, shape index: {}]   ;;  %s226_s2 = inlined_call_operand.vmem [shape: f32[1,512], index: 2, kind: input, shape index: {}]   ;;  %s227_s3 = inlined_call_operand.vmem [shape: f32[8,512], index: 3, kind: output, shape index: {}]  }
   0x1   :  { %v167_v0 = vld [vmem:[%s224_s1 + $0x4] ss:$16 sps:$4 sm:$0xff]   ;;  %98 = vmatprep.mubr.bf16.mxu0 %v173_v1  ;;  %139 = vmatprep.mubr.bf16.mxu1 %v173_v1  ;;  %v169_v2 = vld [vmem:[%s224_s1 + $0xc] ss:$16 sps:$4 sm:$0xff]   ;;  %v171_v3 = vld [vmem:[%s224_s1] ss:$16 sps:$4 sm:$0xff]  }
   0x2   :  { %80 = vmatprep.subr.bf16.mxu0 %v167_v0  ;;  %v172_v4 = vld [vmem:[%s224_s1 + $0x8] ss:$16 sps:$4 sm:$0xff]   ;;  %121 = vmatprep.subr.bf16.mxu1 %v169_v2  ;;  %v15_v5 = vld [vmem:[%s225_s0] sm:$0xf]  ;;  %v23_v7 = vshrl.u32 %v22_v6, 7 }
   0x3   :  { %81 = vmatpush1.bf16.msra.mxu0 %v171_v3  ;;  %122 = vmatpush1.bf16.msra.mxu1 %v172_v4  ;;  %v20_v10 = vld [vmem:[%s226_s2] sm:$0xf] }
   0x4   :  { %v24_v8 = vsub.s32 0, %v23_v7  ;;  %v32_v9 = vsub.s32 2, %v23_v7  ;;  %v28_v11 = vsub.s32 1, %v23_v7  ;;  %v36_v12 = vsub.s32 3, %v23_v7 }
   0x6   :  { %164 = vmatmul.mubr.msk.bf16.vlgmr.msra.gmra.mxu0 %vm62_vm0, %v15_v5  ;;  %165 = vmatmul.mubr.msk.bf16.vlgmr.msra.gmra.mxu1 %vm62_vm0, %v15_v5  ;;  %v25_v13 = vrot.slane %v20_v10, %v24_v8  ;;  %v33_v14 = vrot.slane %v20_v10, %v32_v9  ;;  %v29_v15 = vrot.slane %v20_v10, %v28_v11 }
   0x7   :  { %v37_v16 = vrot.slane %v20_v10, %v36_v12 }
  0xc6   :  { %v100_v17 = vpop.f32.mrf.mxu0  ;;  %v141_v18 = vpop.f32.mrf.mxu1 }
  0xc7   :  { %v101_v19 = vadd.f32 %v100_v17, %v25_v13  ;;  %v142_v20 = vadd.f32 %v141_v18, %v33_v14 }
  0xc8   :  { %v102_v21 = vpop.f32.mrf.mxu0  ;;  %v143_v22 = vpop.f32.mrf.mxu1 }
  0xc9   :  { %v148_v23 = vmax.f32 %v101_v19, 0.0  ;;  %v150_v24 = vmax.f32 %v142_v20, 0.0  ;;  %v103_v25 = vadd.f32 %v102_v21, %v29_v15  ;;  %v144_v26 = vadd.f32 %v143_v22, %v37_v16 }
  0xca   :  { %v104_v27 = vpop.f32.mrf.mxu0  ;;  %v145_v28 = vpop.f32.mrf.mxu1 }
  0xcb   :  { %152 = vst [vmem:[%s227_s3] sm:$0xff] %v148_v23  ;;  %154 = vst [vmem:[%s227_s3 + $0x10] sm:$0xff] %v150_v24  ;;  %v149_v29 = vmax.f32 %v103_v25, 0.0  ;;  %v151_v30 = vmax.f32 %v144_v26, 0.0 }
  0xcc   :  { %v105_v31 = vpop.f32.mrf.mxu0  ;;  %v146_v32 = vpop.f32.mrf.mxu1 }
  0xcd   :  { %153 = vst [vmem:[%s227_s3 + $0x8] sm:$0xff] %v149_v29  ;;  %155 = vst [vmem:[%s227_s3 + $0x18] sm:$0xff] %v151_v30 }

// kernel: generator_forward_pallas.10
= control target key start
LH: loop header
LB: loop body
LE: loop exit
PB: predicated region body
PF: predicated region fallthrough
CT: control target
= control target key end

     0   :  { %s369_s12 = smov 0   ;;  %s371_s13 = smov 0   ;;  %s396_s0 = inlined_call_operand.vmem [shape: f32[4,8,64], index: 0, kind: input, shape index: {}]   ;;  %s397_s1 = inlined_call_operand.vmem [shape: f32[1,64], index: 1, kind: input, shape index: {}]   ;;  %s398_s2 = inlined_call_operand.vmem [shape: f32[1,64], index: 2, kind: input, shape index: {}]   ;;  %s399_s3 = inlined_call_operand.vmem [shape: f32[4,8,64], index: 3, kind: output, shape index: {}]  }
   0x1   :  { %s373_s14 = smov 0  }
   0x2 LB: > { %s25_s15 = sadd.s32 1, %s343_s13  ;;  %p294_p0 = scmp.ge.s32.totalorder %s347_s14, 1  ;;  %s347_s14 = sphi %s373_s14, %s13_s14   ;;  %s343_s13 = sphi %s371_s13, %s401_s13   ;;  %s339_s12 = sphi %s369_s12, %s400_s12  }
   0x3   : > { %p27_p1 = scmp.ge.s32.totalorder %s25_s15, 4  ;;  %p155_p2 = scmp.lt.s32.totalorder %s347_s14, 5 }
   0x5   : > { %s403_s15 = smov (%p27_p1, %s25_s15), 0  ;;  %p156_p3 = pnand %p294_p0, %p155_p2 }
   0x6   : > { %p183_p4 = scmp.lt.s32.totalorder (!%p156_p3), %s339_s12, 3 }
   0x7   : > { %159 = sbr.rel (%p156_p3) target bundleno = 21 (0x15), region = 32 }
   0xc   : > { %s405_s12 = smov (!%p183_p4, %s339_s12), 3  ;;  %v297_v0 = vld [vmem:[%s397_s1] ss:$0 sm:$0xff]  ;;  %vm214_vm0 = vcmask 523264  }
   0xd   : > { %s295_s16 = sshll.u32 %s405_s12, 3  ;;  %v298_v2 = vld [vmem:[%s398_s2] ss:$0 sm:$0xff] }
   0xe   : > { %s189_s21 = scalar_lea.vmem %s396_s0, %s295_s16  ;;  %s196_s26 = scalar_lea.vmem %s399_s3, %s295_s16 }
   0xf   : > { %v197_v1 = vld [vmem:[%s189_s21] sm:$0xff] }
  0x10   : > { %v205_v3 = vmul.f32 %v297_v0, %v197_v1 }
  0x12   : > { %v213_v4 = vadd.f32 %v298_v2, %v205_v3 }
  0x14   : > { %215 = vst.msk [vmem:[%s196_s26] sm:$0xff] %vm214_vm0, %v213_v4 }
  0x15 PF: > { %s13_s14 = sadd.s32 1, %s347_s14   ;;  %s400_s12 = smov %s343_s13 }
  0x16   : > { %p10_p5 = scmp.ge.s32.totalorder %s13_s14, 6   ;;  %s401_s13 = smov %s403_s15 }
  0x18   :  { %12 = sbr.rel (!%p10_p5) target bundleno = 2 (0x2), region = 62 }

// kernel: generator_forward_pallas.9
= control target key start
LH: loop header
LB: loop body
LE: loop exit
PB: predicated region body
PF: predicated region fallthrough
CT: control target
= control target key end

     0   :  { %s997_s15 = smov 0   ;;  %s999_s16 = smov 0   ;;  %s1086_s0 = inlined_call_operand.vmem [shape: bf16[4,8,512], index: 0, kind: input, shape index: {}]   ;;  %s1087_s1 = inlined_call_operand.vmem [shape: bf16[4,512,64], index: 1, kind: input, shape index: {}]   ;;  %s1088_s2 = inlined_call_operand.vmem [shape: f32[1,64], index: 2, kind: input, shape index: {}]   ;;  %s1089_s3 = inlined_call_operand.vmem [shape: f32[4,8,64], index: 3, kind: output, shape index: {0}]   ;;  %s1090_s4 = inlined_call_operand.vmem [shape: f32[4,8,128], index: 4, kind: output, shape index: {1}]  }
   0x1   :  { %s1001_s17 = smov 0  }
   0x2 LB: > { %s27_s18 = sadd.s32 1, %s965_s16  ;;  %p794_p0 = scmp.ge.s32.totalorder %s969_s17, 1  ;;  %s969_s17 = sphi %s1001_s17, %s15_s17   ;;  %s965_s16 = sphi %s999_s16, %s1092_s16   ;;  %s961_s15 = sphi %s997_s15, %s1091_s15  }
   0x3   : > { %p29_p1 = scmp.ge.s32.totalorder %s27_s18, 4  ;;  %p197_p2 = scmp.lt.s32.totalorder %s969_s17, 5 }
   0x5   : > { %s1094_s18 = smov (%p29_p1, %s27_s18), 0  ;;  %p198_p3 = pnand %p794_p0, %p197_p2 }
   0x6   : > { %p239_p4 = scmp.lt.s32.totalorder (!%p198_p3), %s961_s15, 3  ;;  %s971_s7 = smov (!%p198_p3), 64  }
   0x7   : > { %201 = sbr.rel (%p198_p3) target bundleno = 386 (0x182), region = 32 }
   0xc   : > { %s1096_s15 = smov (!%p239_p4, %s961_s15), 3  ;;  %v801_v40 = vld [vmem:[%s1088_s2] ss:$0 sm:$0xff]  ;;  %vm627_vm0 = vcmask 523264  }
   0xd   : > { %s841_s19 = sshll.u32 %s1096_s15, 8  ;;  %s840_s23 = sshll.u32 %s1096_s15, 4 }
   0xe   : > { %s1021_s22 = scalar_lea.vmem %s1087_s1, %s841_s19  ;;  %s247_s26 = scalar_lea.vmem %s1086_s0, %s840_s23 }
   0xf   : > { %v911_v0 = vld [vmem:[%s1021_s22 + $0x78] sm:$0xff]   ;;  %v915_v4 = vld [vmem:[%s1021_s22 + $0x70] sm:$0xff]   ;;  %v919_v8 = vld [vmem:[%s1021_s22 + $0x68] sm:$0xff]   ;;  %s799_s29 = sshll.u32 %s1096_s15, 3 }
  0x10   : > { %v912_v1 = vld [vmem:[%s1021_s22 + $0xf8] sm:$0xff]   ;;  %842 = vmatprep.subr.bf16.mxu0 %v911_v0  ;;  %v916_v5 = vld [vmem:[%s1021_s22 + $0xf0] sm:$0xff]   ;;  %v920_v9 = vld [vmem:[%s1021_s22 + $0xe8] sm:$0xff]   ;;  %s259_s6 = scalar_lea.vmem %s1089_s3, %s799_s29  ;;  %v658_v0 = vlaneseq  ;;  %s264_s10 = scalar_lea.vmem %s1090_s4, %s799_s29 }
  0x11   : > { %v913_v2 = vld [vmem:[%s1021_s22 + $0x38] sm:$0xff]   ;;  %864 = vmatprep.subr.bf16.mxu1 %v912_v1  ;;  %v917_v6 = vld [vmem:[%s1021_s22 + $0x30] sm:$0xff]   ;;  %v921_v10 = vld [vmem:[%s1021_s22 + $0x28] sm:$0xff]  }
  0x12   : > { %v914_v3 = vld [vmem:[%s1021_s22 + $0xb8] sm:$0xff]   ;;  %843 = vmatpush3.bf16.msra.mxu0 %v913_v2  ;;  %v918_v7 = vld [vmem:[%s1021_s22 + $0xb0] sm:$0xff]   ;;  %v922_v11 = vld [vmem:[%s1021_s22 + $0xa8] sm:$0xff]   ;;  %v659_v2 = vshrl.u32 %v658_v0, 7 }
  0x13   : > { %865 = vmatpush3.bf16.msra.mxu1 %v914_v3  ;;  %844 = vmatprep.subr.bf16.mxu0 %v915_v4  ;;  %v923_v12 = vld [vmem:[%s1021_s22 + $0x60] sm:$0xff]   ;;  %v927_v16 = vld [vmem:[%s1021_s22 + $0x58] sm:$0xff]   ;;  %v931_v20 = vld [vmem:[%s1021_s22 + $0x50] sm:$0xff]  }
  0x14   : > { %866 = vmatprep.subr.bf16.mxu1 %v916_v5  ;;  %v924_v13 = vld [vmem:[%s1021_s22 + $0xe0] sm:$0xff]   ;;  %v928_v17 = vld [vmem:[%s1021_s22 + $0xd8] sm:$0xff]   ;;  %v932_v21 = vld [vmem:[%s1021_s22 + $0xd0] sm:$0xff]   ;;  %v660_v4 = vsub.s32 0, %v659_v2 }
  0x15   : > { %v925_v14 = vld [vmem:[%s1021_s22 + $0x20] sm:$0xff]   ;;  %v929_v18 = vld [vmem:[%s1021_s22 + $0x18] sm:$0xff]   ;;  %v933_v22 = vld [vmem:[%s1021_s22 + $0x10] sm:$0xff]  }
  0x16   : > { %845 = vmatpush3.bf16.msra.mxu0 %v917_v6  ;;  %v926_v15 = vld [vmem:[%s1021_s22 + $0xa0] sm:$0xff]   ;;  %v930_v19 = vld [vmem:[%s1021_s22 + $0x98] sm:$0xff]   ;;  %v934_v23 = vld [vmem:[%s1021_s22 + $0x90] sm:$0xff]  }
  0x17   : > { %867 = vmatpush3.bf16.msra.mxu1 %v918_v7  ;;  %846 = vmatprep.subr.bf16.mxu0 %v919_v8  ;;  %v935_v24 = vld [vmem:[%s1021_s22 + $0x48] sm:$0xff]   ;;  %v939_v28 = vld [vmem:[%s1021_s22 + $0x40] sm:$0xff]  }
  0x18   : > { %868 = vmatprep.subr.bf16.mxu1 %v920_v9  ;;  %v936_v25 = vld [vmem:[%s1021_s22 + $0xc8] sm:$0xff]   ;;  %v940_v29 = vld [vmem:[%s1021_s22 + $0xc0] sm:$0xff]  }
  0x19   : > { %v937_v26 = vld [vmem:[%s1021_s22 + $0x8] sm:$0xff]   ;;  %v941_v30 = vld [vmem:[%s1021_s22] sm:$0xff]  }
  0x1a   : > { %847 = vmatpush3.bf16.msra.mxu0 %v921_v10  ;;  %v938_v27 = vld [vmem:[%s1021_s22 + $0x88] sm:$0xff]   ;;  %v942_v31 = vld [vmem:[%s1021_s22 + $0x80] sm:$0xff]  }
  0x1b   : > { %869 = vmatpush3.bf16.msra.mxu1 %v922_v11  ;;  %848 = vmatprep.subr.bf16.mxu0 %v923_v12  ;;  %v267_v32 = vld [vmem:[%s247_s26] sm:$0xff]  ;;  %v268_v33 = vld [vmem:[%s247_s26 + $0x8] sm:$0xff] }
  0x1c   : > { %870 = vmatprep.subr.bf16.mxu1 %v924_v13  ;;  %v802_v34 = vcombine.low %v267_v32, %v267_v32  ;;  %v803_v35 = vcombine.high %v267_v32, %v267_v32  ;;  %v804_v36 = vcombine.low %v268_v33, %v268_v33  ;;  %v805_v37 = vcombine.high %v268_v33, %v268_v33 }
  0x1e   : > { %849 = vmatpush3.bf16.msra.mxu0 %v925_v14  ;;  %578 = vmatprep.mubr.bf16.mxu0 %v803_v35 }
  0x1f   : > { %871 = vmatpush3.bf16.msra.mxu1 %v926_v15  ;;  %850 = vmatprep.subr.bf16.mxu0 %v927_v16 }
  0x20   : > { %872 = vmatprep.subr.bf16.mxu1 %v928_v17  ;;  %618 = vmatprep.mubr.bf16.mxu1 %v805_v37 }
  0x22   : > { %851 = vmatpush3.bf16.msra.mxu0 %v929_v18 }
  0x23   : > { %873 = vmatpush3.bf16.msra.mxu1 %v930_v19  ;;  %852 = vmatprep.subr.bf16.mxu0 %v931_v20 }
  0x24   : > { %874 = vmatprep.subr.bf16.mxu1 %v932_v21 }
  0x26   : > { %853 = vmatpush3.bf16.msra.mxu0 %v933_v22 }
  0x27   : > { %875 = vmatpush3.bf16.msra.mxu1 %v934_v23  ;;  %854 = vmatprep.subr.bf16.mxu0 %v935_v24 }
  0x28   : > { %876 = vmatprep.subr.bf16.mxu1 %v936_v25 }
  0x2a   : > { %855 = vmatpush3.bf16.msra.mxu0 %v937_v26 }
  0x2b   : > { %877 = vmatpush3.bf16.msra.mxu1 %v938_v27  ;;  %856 = vmatprep.subr.bf16.mxu0 %v939_v28 }
  0x2c   : > { %878 = vmatprep.subr.bf16.mxu1 %v940_v29 }
  0x2e   : > { %857 = vmatpush3.bf16.msra.mxu0 %v941_v30 }
  0x2f   : > { %879 = vmatpush3.bf16.msra.mxu1 %v942_v31 }
  0x31   : > { %579 = vmatmul.mubr.bf16.vlgmr.msra.gmra.mxu0 %v802_v34 }
  0x32   : > { %619 = vmatmul.mubr.bf16.vlgmr.msra.gmra.mxu1 %v804_v36 }
  0xf1   : > { %v858_v38 = vpop.f32.mrf.mxu0 }
  0xf2   : > { %v880_v39 = vpop.f32.mrf.mxu1 }
  0xf3   : > { %v859_v41 = vpop.f32.mrf.mxu0 }
  0xf4   : > { %v881_v42 = vpop.f32.mrf.mxu1  ;;  %v860_v43 = vadd.f32 %v859_v41, %v858_v38 }
  0xf5   : > { %v861_v44 = vpop.f32.mrf.mxu0  ;;  %v882_v47 = vadd.f32 %v881_v42, %v880_v39 }
  0xf6   : > { %v883_v45 = vpop.f32.mrf.mxu1  ;;  %v581_v46 = vadd.f32 %v860_v43, %v801_v40 }
  0xf7   : > { %v862_v48 = vpop.f32.mrf.mxu0 }
  0xf8   : > { %v884_v49 = vpop.f32.mrf.mxu1  ;;  %v621_v50 = vadd.f32 %v882_v47, %v581_v46 }
  0xfa   : > { %v626_v51 = vmax.f32 %v621_v50, 0.0 }
  0xfc   : > { %v645_v52 = vmul.f32 %v626_v51, %v626_v51  ;;  %628 = vst.msk [vmem:[%s259_s6] sm:$0xff] %vm627_vm0, %v626_v51  ;;  %v638_v60 = vsel %vm627_vm0, %v626_v51, 0.0 }
  0xfd   : > { %v639_v61 = vrot.slane %v638_v60, 4 }
  0xfe   : > { %v646_v53 = vsel %vm627_vm0, %v645_v52, 0.0 }
  0xff   : > { %v647_v54 = vrot.slane %v646_v53, 4  ;;  %v640_v62 = vadd.f32 %v639_v61, %v638_v60 }
 0x101   : > { %v648_v55 = vadd.f32 %v647_v54, %v646_v53  ;;  %v641_v63 = vrot.slane %v640_v62, 2 }
 0x103   : > { %v649_v56 = vrot.slane %v648_v55, 2  ;;  %v642_v1 = vadd.f32 %v641_v63, %v640_v62 }
 0x105   : > { %v650_v57 = vadd.f32 %v649_v56, %v648_v55  ;;  %v643_v3 = vrot.slane %v642_v1, 1 }
 0x107   : > { %v651_v58 = vrot.slane %v650_v57, 1  ;;  %v644_v5 = vadd.f32 %v643_v3, %v642_v1 }
 0x109   : > { %v652_v59 = vadd.f32 %v651_v58, %v650_v57 }
 0x10b   : > { %654 = vrot.lane.b32.xlu0 %v652_v59, %s971_s7 }
 0x17d   : > { %v655_v6 = vpop.permute.xlu0 %654 }
 0x17e   : > { %v657_v7 = vsel %vm627_vm0, %v644_v5, %v655_v6 }
 0x17f   : > { %v661_v8 = vrot.slane %v657_v7, %v660_v4 }
 0x181   : > { %662 = vst [vmem:[%s264_s10] sm:$0xff] %v661_v8 }
 0x182 PF: > { %s15_s17 = sadd.s32 1, %s969_s17   ;;  %s1091_s15 = smov %s965_s16 }
 0x183   : > { %p12_p5 = scmp.ge.s32.totalorder %s15_s17, 6   ;;  %s1092_s16 = smov %s1094_s18 }
 0x185   :  { %14 = sbr.rel (!%p12_p5) target bundleno = 2 (0x2), region = 77 }

// kernel: generator_forward_pallas.12
= control target key start
LH: loop header
LB: loop body
LE: loop exit
PB: predicated region body
PF: predicated region fallthrough
CT: control target
= control target key end

     0   :  { %s411_s12 = smov 0   ;;  %s413_s13 = smov 0   ;;  %s450_s0 = inlined_call_operand.vmem [shape: f32[4,32,32], index: 0, kind: input, shape index: {}]   ;;  %s451_s1 = inlined_call_operand.vmem [shape: f32[1,32], index: 1, kind: input, shape index: {}]   ;;  %s452_s2 = inlined_call_operand.vmem [shape: f32[1,32], index: 2, kind: input, shape index: {}]   ;;  %s453_s3 = inlined_call_operand.vmem [shape: f32[4,32,32], index: 3, kind: output, shape index: {}]  }
   0x1   :  { %s415_s14 = smov 0  }
   0x2 LB: > { %s25_s15 = sadd.s32 1, %s385_s13  ;;  %p332_p0 = scmp.ge.s32.totalorder %s389_s14, 1  ;;  %s389_s14 = sphi %s415_s14, %s13_s14   ;;  %s385_s13 = sphi %s413_s13, %s455_s13   ;;  %s381_s12 = sphi %s411_s12, %s454_s12  }
   0x3   : > { %p27_p1 = scmp.ge.s32.totalorder %s25_s15, 4  ;;  %p158_p2 = scmp.lt.s32.totalorder %s389_s14, 5 }
   0x5   : > { %s457_s15 = smov (%p27_p1, %s25_s15), 0  ;;  %p159_p3 = pnand %p332_p0, %p158_p2 }
   0x6   : > { %p191_p4 = scmp.lt.s32.totalorder (!%p159_p3), %s381_s12, 3 }
   0x7   : > { %162 = sbr.rel (%p159_p3) target bundleno = 22 (0x16), region = 32 }
   0xc   : > { %s459_s12 = smov (!%p191_p4, %s381_s12), 3  ;;  %v337_v0 = vld [vmem:[%s451_s1] ss:$0 sm:$0xff]  ;;  %vm236_vm0 = vcmask 261120  }
   0xd   : > { %s341_s16 = sshll.u32 %s459_s12, 5  ;;  %v338_v1 = vld [vmem:[%s452_s2] ss:$0 sm:$0xff] }
   0xe   : > { %s198_s21 = scalar_lea.vmem %s450_s0, %s341_s16  ;;  %s208_s26 = scalar_lea.vmem %s453_s3, %s341_s16 }
   0xf   : > { %v210_v2 = vld [vmem:[%s198_s21] sm:$0xff]  ;;  %v211_v3 = vld [vmem:[%s198_s21 + $0x8] sm:$0xff]  ;;  %v212_v4 = vld [vmem:[%s198_s21 + $0x10] sm:$0xff] }
  0x10   : > { %v221_v5 = vmul.f32 %v337_v0, %v210_v2  ;;  %v222_v6 = vmul.f32 %v337_v0, %v211_v3  ;;  %v223_v7 = vmul.f32 %v337_v0, %v212_v4  ;;  %v213_v8 = vld [vmem:[%s198_s21 + $0x18] sm:$0xff] }
  0x11   : > { %v224_v9 = vmul.f32 %v337_v0, %v213_v8 }
  0x12   : > { %v232_v10 = vadd.f32 %v338_v1, %v221_v5  ;;  %v233_v11 = vadd.f32 %v338_v1, %v222_v6  ;;  %v234_v12 = vadd.f32 %v338_v1, %v223_v7 }
  0x13   : > { %v235_v13 = vadd.f32 %v338_v1, %v224_v9 }
  0x14   : > { %237 = vst.msk [vmem:[%s208_s26] sm:$0xff] %vm236_vm0, %v232_v10  ;;  %238 = vst.msk [vmem:[%s208_s26 + $0x8] sm:$0xff] %vm236_vm0, %v233_v11 }
  0x15   : > { %239 = vst.msk [vmem:[%s208_s26 + $0x10] sm:$0xff] %vm236_vm0, %v234_v12  ;;  %240 = vst.msk [vmem:[%s208_s26 + $0x18] sm:$0xff] %vm236_vm0, %v235_v13 }
  0x16 PF: > { %s13_s14 = sadd.s32 1, %s389_s14   ;;  %s454_s12 = smov %s385_s13 }
  0x17   : > { %p10_p5 = scmp.ge.s32.totalorder %s13_s14, 6   ;;  %s455_s13 = smov %s457_s15 }
  0x19   :  { %12 = sbr.rel (!%p10_p5) target bundleno = 2 (0x2), region = 62 }

// kernel: generator_forward_pallas.11
= control target key start
LH: loop header
LB: loop body
LE: loop exit
PB: predicated region body
PF: predicated region fallthrough
CT: control target
= control target key end

     0   :  { %s877_s15 = smov 0   ;;  %s879_s16 = smov 0   ;;  %s959_s0 = inlined_call_operand.vmem [shape: bf16[4,32,256], index: 0, kind: input, shape index: {}]   ;;  %s960_s1 = inlined_call_operand.vmem [shape: bf16[4,256,32], index: 1, kind: input, shape index: {}]   ;;  %s961_s2 = inlined_call_operand.vmem [shape: f32[1,32], index: 2, kind: input, shape index: {}]   ;;  %s962_s3 = inlined_call_operand.vmem [shape: f32[4,32,32], index: 3, kind: output, shape index: {0}]   ;;  %s963_s4 = inlined_call_operand.vmem [shape: f32[4,8,64], index: 4, kind: output, shape index: {1}]  }
   0x1   :  { %s881_s17 = smov 0  }
   0x2 LB: > { %s27_s18 = sadd.s32 1, %s845_s16  ;;  %p702_p0 = scmp.ge.s32.totalorder %s849_s17, 1  ;;  %s849_s17 = sphi %s881_s17, %s15_s17   ;;  %s845_s16 = sphi %s879_s16, %s965_s16   ;;  %s841_s15 = sphi %s877_s15, %s964_s15  }
   0x3   : > { %p29_p1 = scmp.ge.s32.totalorder %s27_s18, 4  ;;  %p199_p2 = scmp.lt.s32.totalorder %s849_s17, 5 }
   0x5   : > { %s967_s18 = smov (%p29_p1, %s27_s18), 0  ;;  %p200_p3 = pnand %p702_p0, %p199_p2 }
   0x6   : > { %p245_p4 = scmp.lt.s32.totalorder (!%p200_p3), %s841_s15, 3  ;;  %s851_s6 = smov (!%p200_p3), 32  }
   0x7   : > { %203 = sbr.rel (%p200_p3) target bundleno = 393 (0x189), region = 32 }
   0xc   : > { %s969_s15 = smov (!%p245_p4, %s841_s15), 3  ;;  %v710_v22 = vld [vmem:[%s961_s2] ss:$0 sm:$0xff]  ;;  %vm489_vm0 = vcmask 261120   ;;  %vm560_vm1 = vcmask 523264  }
   0xd   : > { %s734_s19 = sshll.u32 %s969_s15, 7  ;;  %s733_s23 = sshll.u32 %s969_s15, 5 }
   0xe   : > { %s901_s22 = scalar_lea.vmem %s960_s1, %s734_s19  ;;  %s253_s26 = scalar_lea.vmem %s959_s0, %s733_s23 }
   0xf   : > { %v805_v0 = vld [vmem:[%s901_s22 + $0x78] sm:$0xff]   ;;  %v807_v2 = vld [vmem:[%s901_s22 + $0x70] sm:$0xff]   ;;  %v809_v4 = vld [vmem:[%s901_s22 + $0x68] sm:$0xff]   ;;  %s268_s5 = scalar_lea.vmem %s962_s3, %s733_s23  ;;  %s709_s7 = sshll.u32 %s969_s15, 3 }
  0x10   : > { %v806_v1 = vld [vmem:[%s901_s22 + $0x38] sm:$0xff]   ;;  %736 = vmatprep.subr.bf16.mxu0 %v805_v0  ;;  %764 = vmatprep.subr.bf16.mxu1 %v805_v0  ;;  %v808_v3 = vld [vmem:[%s901_s22 + $0x30] sm:$0xff]   ;;  %v810_v5 = vld [vmem:[%s901_s22 + $0x28] sm:$0xff]   ;;  %s274_s10 = scalar_lea.vmem %s963_s4, %s709_s7 }
  0x11   : > { %737 = vmatpush3.bf16.msra.mxu0 %v806_v1  ;;  %772 = vmatpush3.bf16.msra.mxu1 %v806_v1  ;;  %v811_v6 = vld [vmem:[%s901_s22 + $0x60] sm:$0xff]   ;;  %v813_v8 = vld [vmem:[%s901_s22 + $0x58] sm:$0xff]   ;;  %v815_v10 = vld [vmem:[%s901_s22 + $0x50] sm:$0xff]  }
  0x12   : > { %738 = vmatprep.subr.bf16.mxu0 %v807_v2  ;;  %765 = vmatprep.subr.bf16.mxu1 %v807_v2  ;;  %v812_v7 = vld [vmem:[%s901_s22 + $0x20] sm:$0xff]   ;;  %v814_v9 = vld [vmem:[%s901_s22 + $0x18] sm:$0xff]   ;;  %v816_v13 = vld [vmem:[%s901_s22 + $0x10] sm:$0xff]  }
  0x13   : > { %v823_v11 = vld [vmem:[%s253_s26 + $0x4] ss:$8 sps:$4 sm:$0xff]   ;;  %v826_v12 = vld [vmem:[%s253_s26 + $0x14] ss:$8 sps:$4 sm:$0xff]   ;;  %v821_v18 = vld [vmem:[%s253_s26] ss:$8 sps:$4 sm:$0xff]  }
  0x14   : > { %v817_v14 = vld [vmem:[%s901_s22 + $0x48] sm:$0xff]   ;;  %468 = vmatprep.mubr.bf16.mxu0 %v823_v11  ;;  %476 = vmatprep.mubr.bf16.mxu1 %v826_v12  ;;  %v819_v16 = vld [vmem:[%s901_s22 + $0x40] sm:$0xff]   ;;  %v824_v19 = vld [vmem:[%s253_s26 + $0x10] ss:$8 sps:$4 sm:$0xff]  }
  0x15   : > { %739 = vmatpush3.bf16.msra.mxu0 %v808_v3  ;;  %773 = vmatpush3.bf16.msra.mxu1 %v808_v3  ;;  %v818_v15 = vld [vmem:[%s901_s22 + $0x8] sm:$0xff]   ;;  %v820_v17 = vld [vmem:[%s901_s22] sm:$0xff]  }
  0x16   : > { %740 = vmatprep.subr.bf16.mxu0 %v809_v4  ;;  %766 = vmatprep.subr.bf16.mxu1 %v809_v4  ;;  %v556_v4 = vlaneseq }
  0x19   : > { %741 = vmatpush3.bf16.msra.mxu0 %v810_v5  ;;  %774 = vmatpush3.bf16.msra.mxu1 %v810_v5 }
  0x1a   : > { %742 = vmatprep.subr.bf16.mxu0 %v811_v6  ;;  %767 = vmatprep.subr.bf16.mxu1 %v811_v6  ;;  %v557_v6 = vshrl.u32 %v556_v4, 7 }
  0x1d   : > { %743 = vmatpush3.bf16.msra.mxu0 %v812_v7  ;;  %775 = vmatpush3.bf16.msra.mxu1 %v812_v7 }
  0x1e   : > { %744 = vmatprep.subr.bf16.mxu0 %v813_v8  ;;  %768 = vmatprep.subr.bf16.mxu1 %v813_v8  ;;  %v558_v8 = vsub.s32 0, %v557_v6 }
  0x21   : > { %745 = vmatpush3.bf16.msra.mxu0 %v814_v9  ;;  %776 = vmatpush3.bf16.msra.mxu1 %v814_v9 }
  0x22   : > { %746 = vmatprep.subr.bf16.mxu0 %v815_v10  ;;  %769 = vmatprep.subr.bf16.mxu1 %v815_v10 }
  0x25   : > { %747 = vmatpush3.bf16.msra.mxu0 %v816_v13  ;;  %777 = vmatpush3.bf16.msra.mxu1 %v816_v13 }
  0x26   : > { %748 = vmatprep.subr.bf16.mxu0 %v817_v14  ;;  %770 = vmatprep.subr.bf16.mxu1 %v817_v14 }
  0x29   : > { %749 = vmatpush3.bf16.msra.mxu0 %v818_v15  ;;  %778 = vmatpush3.bf16.msra.mxu1 %v818_v15 }
  0x2a   : > { %750 = vmatprep.subr.bf16.mxu0 %v819_v16  ;;  %771 = vmatprep.subr.bf16.mxu1 %v819_v16 }
  0x2d   : > { %751 = vmatpush3.bf16.msra.mxu0 %v820_v17  ;;  %779 = vmatpush3.bf16.msra.mxu1 %v820_v17 }
  0x30   : > { %469 = vmatmul.mubr.bf16.vlgmr.msra.gmra.mxu0 %v821_v18  ;;  %477 = vmatmul.mubr.bf16.vlgmr.msra.gmra.mxu1 %v824_v19 }
  0xf0   : > { %v752_v20 = vpop.f32.mrf.mxu0  ;;  %v758_v21 = vpop.f32.mrf.mxu1 }
  0xf2   : > { %v753_v23 = vpop.f32.mrf.mxu0  ;;  %v759_v24 = vpop.f32.mrf.mxu1 }
  0xf3   : > { %v754_v25 = vadd.f32 %v753_v23, %v752_v20  ;;  %v760_v26 = vadd.f32 %v759_v24, %v758_v21 }
  0xf4   : > { %v755_v27 = vpop.f32.mrf.mxu0  ;;  %v761_v28 = vpop.f32.mrf.mxu1 }
  0xf5   : > { %v471_v29 = vadd.f32 %v754_v25, %v710_v22  ;;  %v479_v30 = vadd.f32 %v760_v26, %v710_v22 }
  0xf6   : > { %v756_v31 = vpop.f32.mrf.mxu0  ;;  %v762_v32 = vpop.f32.mrf.mxu1 }
  0xf7   : > { %v485_v33 = vmax.f32 %v471_v29, 0.0  ;;  %v487_v34 = vmax.f32 %v479_v30, 0.0  ;;  %v757_v35 = vadd.f32 %v756_v31, %v755_v27  ;;  %v763_v36 = vadd.f32 %v762_v32, %v761_v28 }
  0xf9   : > { %490 = vst.msk [vmem:[%s268_s5] sm:$0xff] %vm489_vm0, %v485_v33  ;;  %492 = vst.msk [vmem:[%s268_s5 + $0x10] sm:$0xff] %vm489_vm0, %v487_v34  ;;  %v474_v37 = vadd.f32 %v757_v35, %v710_v22  ;;  %v482_v38 = vadd.f32 %v763_v36, %v710_v22  ;;  %v534_v39 = vmul.f32 %v485_v33, %v485_v33  ;;  %v521_v42 = vsel %vm489_vm0, %v485_v33, 0.0 }
  0xfa   : > { %v536_v43 = vmul.f32 %v487_v34, %v487_v34  ;;  %v524_v48 = vsel %vm489_vm0, %v487_v34, 0.0 }
  0xfb   : > { %v486_v40 = vmax.f32 %v474_v37, 0.0  ;;  %v488_v41 = vmax.f32 %v482_v38, 0.0  ;;  %v538_v47 = vsel %vm489_vm0, %v534_v39, 0.0 }
  0xfc   : > { %v541_v53 = vsel %vm489_vm0, %v536_v43, 0.0 }
  0xfd   : > { %491 = vst.msk [vmem:[%s268_s5 + $0x8] sm:$0xff] %vm489_vm0, %v486_v40  ;;  %v522_v44 = vsel %vm489_vm0, %v486_v40, 0.0  ;;  %v535_v45 = vmul.f32 %v486_v40, %v486_v40  ;;  %493 = vst.msk [vmem:[%s268_s5 + $0x18] sm:$0xff] %vm489_vm0, %v488_v41  ;;  %v537_v50 = vmul.f32 %v488_v41, %v488_v41  ;;  %v526_v54 = vsel %vm489_vm0, %v488_v41, 0.0 }
  0xfe   : > { %v523_v46 = vadd.f32 %v522_v44, %v521_v42 }
  0xff   : > { %v539_v49 = vsel %vm489_vm0, %v535_v45, 0.0  ;;  %v543_v57 = vsel %vm489_vm0, %v537_v50, 0.0 }
 0x100   : > { %v540_v51 = vadd.f32 %v539_v49, %v538_v47  ;;  %v525_v52 = vadd.f32 %v524_v48, %v523_v46 }
 0x102   : > { %v527_v55 = vadd.f32 %v526_v54, %v525_v52  ;;  %v542_v56 = vadd.f32 %v541_v53, %v540_v51 }
 0x104   : > { %v544_v58 = vadd.f32 %v543_v57, %v542_v56  ;;  %v528_v1 = vrot.slane %v527_v55, 4 }
 0x106   : > { %v545_v59 = vrot.slane %v544_v58, 4  ;;  %v529_v2 = vadd.f32 %v528_v1, %v527_v55 }
 0x108   : > { %v546_v60 = vadd.f32 %v545_v59, %v544_v58  ;;  %v530_v3 = vrot.slane %v529_v2, 2 }
 0x10a   : > { %v547_v61 = vrot.slane %v546_v60, 2  ;;  %v531_v5 = vadd.f32 %v530_v3, %v529_v2 }
 0x10c   : > { %v548_v62 = vadd.f32 %v547_v61, %v546_v60  ;;  %v532_v7 = vrot.slane %v531_v5, 1 }
 0x10e   : > { %v549_v63 = vrot.slane %v548_v62, 1  ;;  %v533_v9 = vadd.f32 %v532_v7, %v531_v5 }
 0x110   : > { %v550_v0 = vadd.f32 %v549_v63, %v548_v62 }
 0x112   : > { %552 = vrot.lane.b32.xlu0 %v550_v0, %s851_s6 }
 0x184   : > { %v553_v10 = vpop.permute.xlu0 %552 }
 0x185   : > { %v555_v11 = vsel %vm489_vm0, %v533_v9, %v553_v10 }
 0x186   : > { %v559_v12 = vrot.slane %v555_v11, %v558_v8 }
 0x188   : > { %561 = vst.msk [vmem:[%s274_s10] sm:$0xff] %vm560_vm1, %v559_v12 }
 0x189 PF: > { %s15_s17 = sadd.s32 1, %s849_s17   ;;  %s964_s15 = smov %s845_s16 }
 0x18a   : > { %p12_p5 = scmp.ge.s32.totalorder %s15_s17, 6   ;;  %s965_s16 = smov %s967_s18 }
 0x18c   :  { %14 = sbr.rel (!%p12_p5) target bundleno = 2 (0x2), region = 77 }

// kernel: generator_forward_pallas.14
= control target key start
LH: loop header
LB: loop body
LE: loop exit
PB: predicated region body
PF: predicated region fallthrough
CT: control target
= control target key end

     0   :  { %s459_s12 = smov 0   ;;  %s461_s13 = smov 0   ;;  %s568_s0 = inlined_call_operand.vmem [shape: f32[4,128,16], index: 0, kind: input, shape index: {}]   ;;  %s569_s1 = inlined_call_operand.vmem [shape: f32[1,16], index: 1, kind: input, shape index: {}]   ;;  %s570_s2 = inlined_call_operand.vmem [shape: f32[1,16], index: 2, kind: input, shape index: {}]   ;;  %s571_s3 = inlined_call_operand.vmem [shape: f32[4,128,16], index: 3, kind: output, shape index: {}]  }
   0x1   :  { %s463_s14 = smov 0  }
   0x2 LB: > { %s25_s15 = sadd.s32 1, %s433_s13  ;;  %p380_p0 = scmp.ge.s32.totalorder %s437_s14, 1  ;;  %s437_s14 = sphi %s463_s14, %s13_s14   ;;  %s433_s13 = sphi %s461_s13, %s573_s13   ;;  %s429_s12 = sphi %s459_s12, %s572_s12  }
   0x3   : > { %p27_p1 = scmp.ge.s32.totalorder %s25_s15, 4  ;;  %p158_p2 = scmp.lt.s32.totalorder %s437_s14, 5 }
   0x5   : > { %s575_s15 = smov (%p27_p1, %s25_s15), 0  ;;  %p159_p3 = pnand %p380_p0, %p158_p2 }
   0x6   : > { %p191_p4 = scmp.lt.s32.totalorder (!%p159_p3), %s429_s12, 3 }
   0x7   : > { %162 = sbr.rel (%p159_p3) target bundleno = 29 (0x1d), region = 32 }
   0xc   : > { %s577_s12 = smov (!%p191_p4, %s429_s12), 3  ;;  %v385_v0 = vld [vmem:[%s569_s1] ss:$0 sm:$0xff]  ;;  %vm272_vm0 = vcmask 130048  }
   0xd   : > { %s389_s16 = sshll.u32 %s577_s12, 7  ;;  %v488_v1 = vld [vmem:[%s570_s2] ss:$0 sm:$0xff] }
   0xe   : > { %s483_s21 = scalar_lea.vmem %s568_s0, %s389_s16  ;;  %s499_s26 = scalar_lea.vmem %s571_s3, %s389_s16 }
   0xf   : > { %v210_v2 = vld [vmem:[%s483_s21] sm:$0xff]  ;;  %v211_v3 = vld [vmem:[%s483_s21 + $0x8] sm:$0xff]  ;;  %v212_v4 = vld [vmem:[%s483_s21 + $0x10] sm:$0xff] }
  0x10   : > { %v233_v5 = vmul.f32 %v385_v0, %v210_v2  ;;  %v234_v6 = vmul.f32 %v385_v0, %v211_v3  ;;  %v235_v7 = vmul.f32 %v385_v0, %v212_v4  ;;  %v213_v8 = vld [vmem:[%s483_s21 + $0x18] sm:$0xff]  ;;  %v214_v9 = vld [vmem:[%s483_s21 + $0x20] sm:$0xff]  ;;  %v215_v10 = vld [vmem:[%s483_s21 + $0x28] sm:$0xff] }
  0x11   : > { %v236_v11 = vmul.f32 %v385_v0, %v213_v8  ;;  %v237_v12 = vmul.f32 %v385_v0, %v214_v9  ;;  %v238_v13 = vmul.f32 %v385_v0, %v215_v10  ;;  %v216_v14 = vld [vmem:[%s483_s21 + $0x30] sm:$0xff]  ;;  %v217_v15 = vld [vmem:[%s483_s21 + $0x38] sm:$0xff]  ;;  %v218_v16 = vld [vmem:[%s483_s21 + $0x40] sm:$0xff] }
  0x12   : > { %v256_v17 = vadd.f32 %v488_v1, %v233_v5  ;;  %v257_v18 = vadd.f32 %v488_v1, %v234_v6  ;;  %v258_v19 = vadd.f32 %v488_v1, %v235_v7  ;;  %v239_v20 = vmul.f32 %v385_v0, %v216_v14  ;;  %v219_v21 = vld [vmem:[%s483_s21 + $0x48] sm:$0xff]  ;;  %v220_v22 = vld [vmem:[%s483_s21 + $0x50] sm:$0xff]  ;;  %v221_v23 = vld [vmem:[%s483_s21 + $0x58] sm:$0xff] }
  0x13   : > { %v259_v24 = vadd.f32 %v488_v1, %v236_v11  ;;  %v260_v25 = vadd.f32 %v488_v1, %v237_v12  ;;  %v261_v26 = vadd.f32 %v488_v1, %v238_v13  ;;  %v240_v27 = vmul.f32 %v385_v0, %v217_v15  ;;  %v222_v28 = vld [vmem:[%s483_s21 + $0x60] sm:$0xff]  ;;  %v223_v29 = vld [vmem:[%s483_s21 + $0x68] sm:$0xff]  ;;  %v224_v30 = vld [vmem:[%s483_s21 + $0x70] sm:$0xff] }
  0x14   : > { %273 = vst.msk [vmem:[%s499_s26] sm:$0xff] %vm272_vm0, %v256_v17  ;;  %274 = vst.msk [vmem:[%s499_s26 + $0x8] sm:$0xff] %vm272_vm0, %v257_v18  ;;  %v262_v31 = vadd.f32 %v488_v1, %v239_v20  ;;  %v241_v32 = vmul.f32 %v385_v0, %v218_v16  ;;  %v242_v33 = vmul.f32 %v385_v0, %v219_v21  ;;  %v225_v35 = vld [vmem:[%s483_s21 + $0x78] sm:$0xff] }
  0x15   : > { %275 = vst.msk [vmem:[%s499_s26 + $0x10] sm:$0xff] %vm272_vm0, %v258_v19  ;;  %v243_v34 = vmul.f32 %v385_v0, %v220_v22  ;;  %276 = vst.msk [vmem:[%s499_s26 + $0x18] sm:$0xff] %vm272_vm0, %v259_v24  ;;  %v263_v36 = vadd.f32 %v488_v1, %v240_v27  ;;  %v244_v37 = vmul.f32 %v385_v0, %v221_v23 }
  0x16   : > { %277 = vst.msk [vmem:[%s499_s26 + $0x20] sm:$0xff] %vm272_vm0, %v260_v25  ;;  %278 = vst.msk [vmem:[%s499_s26 + $0x28] sm:$0xff] %vm272_vm0, %v261_v26  ;;  %v245_v38 = vmul.f32 %v385_v0, %v222_v28  ;;  %v246_v39 = vmul.f32 %v385_v0, %v223_v29  ;;  %v264_v40 = vadd.f32 %v488_v1, %v241_v32 }
  0x17   : > { %279 = vst.msk [vmem:[%s499_s26 + $0x30] sm:$0xff] %vm272_vm0, %v262_v31  ;;  %v265_v41 = vadd.f32 %v488_v1, %v242_v33  ;;  %v266_v42 = vadd.f32 %v488_v1, %v243_v34  ;;  %v247_v43 = vmul.f32 %v385_v0, %v224_v30  ;;  %280 = vst.msk [vmem:[%s499_s26 + $0x38] sm:$0xff] %vm272_vm0, %v263_v36 }
  0x18   : > { %v267_v44 = vadd.f32 %v488_v1, %v244_v37  ;;  %v268_v45 = vadd.f32 %v488_v1, %v245_v38  ;;  %v269_v46 = vadd.f32 %v488_v1, %v246_v39  ;;  %v248_v47 = vmul.f32 %v385_v0, %v225_v35  ;;  %281 = vst.msk [vmem:[%s499_s26 + $0x40] sm:$0xff] %vm272_vm0, %v264_v40 }
  0x19   : > { %282 = vst.msk [vmem:[%s499_s26 + $0x48] sm:$0xff] %vm272_vm0, %v265_v41  ;;  %283 = vst.msk [vmem:[%s499_s26 + $0x50] sm:$0xff] %vm272_vm0, %v266_v42  ;;  %v270_v48 = vadd.f32 %v488_v1, %v247_v43 }
  0x1a   : > { %284 = vst.msk [vmem:[%s499_s26 + $0x58] sm:$0xff] %vm272_vm0, %v267_v44  ;;  %285 = vst.msk [vmem:[%s499_s26 + $0x60] sm:$0xff] %vm272_vm0, %v268_v45  ;;  %v271_v49 = vadd.f32 %v488_v1, %v248_v47 }
  0x1b   : > { %286 = vst.msk [vmem:[%s499_s26 + $0x68] sm:$0xff] %vm272_vm0, %v269_v46  ;;  %287 = vst.msk [vmem:[%s499_s26 + $0x70] sm:$0xff] %vm272_vm0, %v270_v48 }
  0x1c   : > { %288 = vst.msk [vmem:[%s499_s26 + $0x78] sm:$0xff] %vm272_vm0, %v271_v49 }
  0x1d PF: > { %s13_s14 = sadd.s32 1, %s437_s14   ;;  %s572_s12 = smov %s433_s13 }
  0x1e   : > { %p10_p5 = scmp.ge.s32.totalorder %s13_s14, 6   ;;  %s573_s13 = smov %s575_s15 }
  0x20   :  { %12 = sbr.rel (!%p10_p5) target bundleno = 2 (0x2), region = 62 }

// kernel: generator_forward_pallas.13
= control target key start
LH: loop header
LB: loop body
LE: loop exit
PB: predicated region body
PF: predicated region fallthrough
CT: control target
= control target key end

     0   :  { %s1061_s15 = smov 0   ;;  %s1063_s16 = smov 0   ;;  %s1237_s0 = inlined_call_operand.vmem [shape: bf16[4,128,128], index: 0, kind: input, shape index: {}]   ;;  %s1238_s1 = inlined_call_operand.vmem [shape: bf16[4,128,16], index: 1, kind: input, shape index: {}]   ;;  %s1239_s2 = inlined_call_operand.vmem [shape: f32[1,16], index: 2, kind: input, shape index: {}]   ;;  %s1240_s3 = inlined_call_operand.vmem [shape: f32[4,128,16], index: 3, kind: output, shape index: {0}]   ;;  %s1241_s4 = inlined_call_operand.vmem [shape: f32[4,8,32], index: 4, kind: output, shape index: {1}]  }
   0x1   :  { %s1065_s17 = smov 0  }
   0x2 LB: > { %s27_s18 = sadd.s32 1, %s1029_s16  ;;  %p876_p0 = scmp.ge.s32.totalorder %s1033_s17, 1  ;;  %s1033_s17 = sphi %s1065_s17, %s15_s17   ;;  %s1029_s16 = sphi %s1063_s16, %s1243_s16   ;;  %s1025_s15 = sphi %s1061_s15, %s1242_s15  }
   0x3   : > { %p29_p1 = scmp.ge.s32.totalorder %s27_s18, 4  ;;  %p198_p2 = scmp.lt.s32.totalorder %s1033_s17, 5 }
   0x5   : > { %s1245_s18 = smov (%p29_p1, %s27_s18), 0  ;;  %p199_p3 = pnand %p876_p0, %p198_p2 }
   0x6   : > { %p243_p4 = scmp.lt.s32.totalorder (!%p199_p3), %s1025_s15, 3  ;;  %s1035_s6 = smov (!%p199_p3), 16  }
   0x7   : > { %202 = sbr.rel (%p199_p3) target bundleno = 415 (0x19f), region = 32 }
   0xc   : > { %s1247_s15 = smov (!%p243_p4, %s1025_s15), 3  ;;  %v1111_v16 = vld [vmem:[%s1239_s2] ss:$0 sm:$0xff]  ;;  %vm522_vm0 = vcmask 130048   ;;  %vm737_vm1 = vcmask 261120  }
   0xd   : > { %s903_s19 = sshll.u32 %s1247_s15, 6  ;;  %s905_s28 = sshll.u32 %s1247_s15, 7 }
   0xe   : > { %s1085_s22 = scalar_lea.vmem %s1238_s1, %s903_s19  ;;  %s1093_s25 = scalar_lea.vmem %s1237_s0, %s903_s19 }
   0xf   : > { %v995_v0 = vld [vmem:[%s1085_s22 + $0x38] sm:$0xff]   ;;  %v996_v1 = vld [vmem:[%s1085_s22 + $0x30] sm:$0xff]   ;;  %v997_v2 = vld [vmem:[%s1085_s22 + $0x28] sm:$0xff]   ;;  %s1119_s5 = scalar_lea.vmem %s1240_s3, %s905_s28  ;;  %s883_s7 = sshll.u32 %s1247_s15, 3 }
  0x10   : > { %922 = vmatprep.subr.bf16.mxu0 %v995_v0  ;;  %954 = vmatprep.subr.bf16.mxu1 %v995_v0  ;;  %v998_v3 = vld [vmem:[%s1085_s22 + $0x20] sm:$0xff]   ;;  %v999_v5 = vld [vmem:[%s1085_s22 + $0x18] sm:$0xff]   ;;  %v1000_v7 = vld [vmem:[%s1085_s22 + $0x10] sm:$0xff]   ;;  %s271_s10 = scalar_lea.vmem %s1241_s4, %s883_s7 }
  0x11   : > { %923 = vmatpush3.bf16.msra.mxu0 %v995_v0  ;;  %962 = vmatpush3.bf16.msra.mxu1 %v995_v0  ;;  %v1003_v4 = vld [vmem:[%s1093_s25] sm:$0xff]   ;;  %v1001_v8 = vld [vmem:[%s1085_s22 + $0x8] sm:$0xff]   ;;  %v1005_v12 = vld [vmem:[%s1093_s25 + $0x10] sm:$0xff]  }
  0x12   : > { %924 = vmatprep.subr.bf16.mxu0 %v996_v1  ;;  %955 = vmatprep.subr.bf16.mxu1 %v996_v1  ;;  %v1007_v6 = vld [vmem:[%s1093_s25 + $0x20] sm:$0xff]   ;;  %v1004_v10 = vld [vmem:[%s1093_s25 + $0x8] sm:$0xff]   ;;  %v1009_v13 = vld [vmem:[%s1093_s25 + $0x30] sm:$0xff]  }
  0x13   : > { %938 = vmatprep.mubr.bf16.mxu0 %v1003_v4  ;;  %946 = vmatprep.mubr.bf16.mxu1 %v1007_v6  ;;  %v1002_v9 = vld [vmem:[%s1085_s22] sm:$0xff]   ;;  %v1008_v11 = vld [vmem:[%s1093_s25 + $0x28] sm:$0xff]   ;;  %v1006_v14 = vld [vmem:[%s1093_s25 + $0x18] sm:$0xff]  }
  0x14   : > { %v1010_v15 = vld [vmem:[%s1093_s25 + $0x38] sm:$0xff]  }
  0x15   : > { %925 = vmatpush3.bf16.msra.mxu0 %v996_v1  ;;  %963 = vmatpush3.bf16.msra.mxu1 %v996_v1 }
  0x16   : > { %926 = vmatprep.subr.bf16.mxu0 %v997_v2  ;;  %956 = vmatprep.subr.bf16.mxu1 %v997_v2 }
  0x19   : > { %927 = vmatpush3.bf16.msra.mxu0 %v997_v2  ;;  %964 = vmatpush3.bf16.msra.mxu1 %v997_v2 }
  0x1a   : > { %928 = vmatprep.subr.bf16.mxu0 %v998_v3  ;;  %957 = vmatprep.subr.bf16.mxu1 %v998_v3 }
  0x1d   : > { %929 = vmatpush3.bf16.msra.mxu0 %v998_v3  ;;  %965 = vmatpush3.bf16.msra.mxu1 %v998_v3 }
  0x1e   : > { %930 = vmatprep.subr.bf16.mxu0 %v999_v5  ;;  %958 = vmatprep.subr.bf16.mxu1 %v999_v5 }
  0x21   : > { %931 = vmatpush3.bf16.msra.mxu0 %v999_v5  ;;  %966 = vmatpush3.bf16.msra.mxu1 %v999_v5 }
  0x22   : > { %932 = vmatprep.subr.bf16.mxu0 %v1000_v7  ;;  %959 = vmatprep.subr.bf16.mxu1 %v1000_v7 }
  0x25   : > { %933 = vmatpush3.bf16.msra.mxu0 %v1000_v7  ;;  %967 = vmatpush3.bf16.msra.mxu1 %v1000_v7 }
  0x26   : > { %934 = vmatprep.subr.bf16.mxu0 %v1001_v8  ;;  %960 = vmatprep.subr.bf16.mxu1 %v1001_v8 }
  0x29   : > { %935 = vmatpush3.bf16.msra.mxu0 %v1001_v8  ;;  %968 = vmatpush3.bf16.msra.mxu1 %v1001_v8 }
  0x2a   : > { %936 = vmatprep.subr.bf16.mxu0 %v1002_v9  ;;  %961 = vmatprep.subr.bf16.mxu1 %v1002_v9 }
  0x2d   : > { %937 = vmatpush3.bf16.msra.mxu0 %v1002_v9  ;;  %969 = vmatpush3.bf16.msra.mxu1 %v1002_v9 }
  0x30   : > { %939 = vmatmul.mubr.bf16.vlgmr.msra.gmra.mxu0 %v1004_v10  ;;  %947 = vmatmul.mubr.bf16.vlgmr.msra.gmra.mxu1 %v1008_v11 }
  0x31   : > { %942 = vmatprep.mubr.bf16.mxu0 %v1005_v12  ;;  %950 = vmatprep.mubr.bf16.mxu1 %v1009_v13 }
  0x38   : > { %943 = vmatmul.mubr.bf16.gmra.mxu0 %v1006_v14  ;;  %951 = vmatmul.mubr.bf16.gmra.mxu1 %v1010_v15 }
  0xf0   : > { %v940_v17 = vpop.f32.mrf.mxu0  ;;  %v948_v18 = vpop.f32.mrf.mxu1 }
  0xf1   : > { %v452_v19 = vadd.f32 %v940_v17, %v1111_v16  ;;  %v484_v20 = vadd.f32 %v948_v18, %v1111_v16 }
  0xf2   : > { %v443_v21 = vpop.f32.mrf.mxu0  ;;  %v475_v22 = vpop.f32.mrf.mxu1 }
  0xf3   : > { %v508_v23 = vmax.f32 %v452_v19, 0.0  ;;  %v444_v24 = vadd.f32 %v1111_v16, %v443_v21  ;;  %v1122_v25 = vmax.f32 %v484_v20, 0.0  ;;  %v476_v26 = vadd.f32 %v1111_v16, %v475_v22 }
  0xf4   : > { %v941_v27 = vpop.f32.mrf.mxu0  ;;  %v949_v28 = vpop.f32.mrf.mxu1 }
  0xf5   : > { %525 = vst.msk [vmem:[%s1119_s5 + $0x10] sm:$0xff] %vm522_vm0, %v508_v23  ;;  %v506_v29 = vmax.f32 %v444_v24, 0.0  ;;  %v455_v30 = vadd.f32 %v941_v27, %v1111_v16  ;;  %533 = vst.msk [vmem:[%s1119_s5 + $0x50] sm:$0xff] %vm522_vm0, %v1122_v25  ;;  %v1131_v32 = vmax.f32 %v476_v26, 0.0  ;;  %v487_v33 = vadd.f32 %v949_v28, %v1111_v16 }
  0xf6   : > { %v446_v31 = vpop.f32.mrf.mxu0  ;;  %v478_v34 = vpop.f32.mrf.mxu1  ;;  %v677_v45 = vmul.f32 %v508_v23, %v508_v23  ;;  %v641_v49 = vsel %vm522_vm0, %v508_v23, 0.0 }
  0xf7   : > { %523 = vst.msk [vmem:[%s1119_s5] sm:$0xff] %vm522_vm0, %v506_v29  ;;  %v509_v35 = vmax.f32 %v455_v30, 0.0  ;;  %v447_v36 = vadd.f32 %v1111_v16, %v446_v31  ;;  %531 = vst.msk [vmem:[%s1119_s5 + $0x40] sm:$0xff] %vm522_vm0, %v1131_v32  ;;  %v675_v39 = vmul.f32 %v506_v29, %v506_v29  ;;  %v1143_v43 = vmax.f32 %v487_v33, 0.0 }
  0xf8   : > { %v944_v37 = vpop.f32.mrf.mxu0  ;;  %v952_v38 = vpop.f32.mrf.mxu1  ;;  %v479_v44 = vadd.f32 %v1111_v16, %v478_v34  ;;  %v638_v50 = vsel %vm522_vm0, %v506_v29, 0.0  ;;  %v694_v63 = vsel %vm522_vm0, %v677_v45, 0.0 }
  0xf9   : > { %526 = vst.msk [vmem:[%s1119_s5 + $0x18] sm:$0xff] %vm522_vm0, %v509_v35  ;;  %v468_v40 = vadd.f32 %v944_v37, %v1111_v16  ;;  %v507_v41 = vmax.f32 %v447_v36, 0.0  ;;  %534 = vst.msk [vmem:[%s1119_s5 + $0x58] sm:$0xff] %vm522_vm0, %v1143_v43  ;;  %v691_v54 = vsel %vm522_vm0, %v675_v39, 0.0  ;;  %v500_v57 = vadd.f32 %v952_v38, %v1111_v16 }
  0xfa   : > { %v459_v42 = vpop.f32.mrf.mxu0  ;;  %v491_v48 = vpop.f32.mrf.mxu1  ;;  %v678_v58 = vmul.f32 %v509_v35, %v509_v35  ;;  %v515_v62 = vmax.f32 %v479_v44, 0.0  ;;  %v643_v3 = vsel %vm522_vm0, %v509_v35, 0.0  ;;  %v683_v37 = vmul.f32 %v1131_v32, %v1131_v32 }
  0xfb   : > { %v512_v46 = vmax.f32 %v468_v40, 0.0  ;;  %v460_v47 = vadd.f32 %v1111_v16, %v459_v42  ;;  %524 = vst.msk [vmem:[%s1119_s5 + $0x8] sm:$0xff] %vm522_vm0, %v507_v41  ;;  %v639_v51 = vsel %vm522_vm0, %v507_v41, 0.0  ;;  %v676_v52 = vmul.f32 %v507_v41, %v507_v41 }
  0xfc   : > { %v945_v53 = vpop.f32.mrf.mxu0  ;;  %v640_v55 = vadd.f32 %v639_v51, %v638_v50  ;;  %v953_v2 = vpop.f32.mrf.mxu1  ;;  %532 = vst.msk [vmem:[%s1119_s5 + $0x48] sm:$0xff] %vm522_vm0, %v515_v62  ;;  %v1168_v9 = vmax.f32 %v500_v57, 0.0  ;;  %v696_v10 = vsel %vm522_vm0, %v678_v58, 0.0  ;;  %v492_v23 = vadd.f32 %v1111_v16, %v491_v48 }
  0xfd   : > { %529 = vst.msk [vmem:[%s1119_s5 + $0x30] sm:$0xff] %vm522_vm0, %v512_v46  ;;  %v510_v56 = vmax.f32 %v460_v47, 0.0  ;;  %v692_v59 = vsel %vm522_vm0, %v676_v52, 0.0  ;;  %v471_v60 = vadd.f32 %v945_v53, %v1111_v16  ;;  %v681_v17 = vmul.f32 %v512_v46, %v512_v46 }
  0xfe   : > { %v462_v61 = vpop.f32.mrf.mxu0  ;;  %v642_v0 = vadd.f32 %v641_v49, %v640_v55  ;;  %v693_v1 = vadd.f32 %v692_v59, %v691_v54  ;;  %537 = vst.msk [vmem:[%s1119_s5 + $0x70] sm:$0xff] %vm522_vm0, %v1168_v9  ;;  %v494_v15 = vpop.f32.mrf.mxu1  ;;  %v503_v24 = vadd.f32 %v953_v2, %v1111_v16  ;;  %v649_v26 = vsel %vm522_vm0, %v512_v46, 0.0 }
  0xff   : > { %527 = vst.msk [vmem:[%s1119_s5 + $0x20] sm:$0xff] %vm522_vm0, %v510_v56  ;;  %v679_v4 = vmul.f32 %v510_v56, %v510_v56  ;;  %v513_v5 = vmax.f32 %v471_v60, 0.0  ;;  %v463_v6 = vadd.f32 %v1111_v16, %v462_v61  ;;  %v645_v11 = vsel %vm522_vm0, %v510_v56, 0.0 }
 0x100   : > { %v695_v7 = vadd.f32 %v694_v63, %v693_v1  ;;  %v644_v8 = vadd.f32 %v643_v3, %v642_v0  ;;  %v495_v29 = vadd.f32 %v1111_v16, %v494_v15  ;;  %v518_v33 = vmax.f32 %v492_v23, 0.0 }
 0x101   : > { %530 = vst.msk [vmem:[%s1119_s5 + $0x38] sm:$0xff] %vm522_vm0, %v513_v5  ;;  %v511_v12 = vmax.f32 %v463_v6, 0.0  ;;  %v698_v18 = vsel %vm522_vm0, %v679_v4, 0.0  ;;  %v682_v27 = vmul.f32 %v513_v5, %v513_v5  ;;  %v521_v34 = vmax.f32 %v503_v24, 0.0 }
 0x102   : > { %v646_v13 = vadd.f32 %v645_v11, %v644_v8  ;;  %v697_v14 = vadd.f32 %v696_v10, %v695_v7  ;;  %v702_v35 = vsel %vm522_vm0, %v681_v17, 0.0  ;;  %v651_v36 = vsel %vm522_vm0, %v513_v5, 0.0  ;;  %535 = vst.msk [vmem:[%s1119_s5 + $0x60] sm:$0xff] %vm522_vm0, %v518_v33 }
 0x103   : > { %528 = vst.msk [vmem:[%s1119_s5 + $0x28] sm:$0xff] %vm522_vm0, %v511_v12  ;;  %v647_v19 = vsel %vm522_vm0, %v511_v12, 0.0  ;;  %v680_v20 = vmul.f32 %v511_v12, %v511_v12  ;;  %v519_v38 = vmax.f32 %v495_v29, 0.0  ;;  %538 = vst.msk [vmem:[%s1119_s5 + $0x78] sm:$0xff] %vm522_vm0, %v521_v34  ;;  %v704_v16 = vsel %vm522_vm0, %v682_v27, 0.0 }
 0x104   : > { %v699_v21 = vadd.f32 %v698_v18, %v697_v14  ;;  %v648_v22 = vadd.f32 %v647_v19, %v646_v13  ;;  %v653_v41 = vsel %vm522_vm0, %v1131_v32, 0.0  ;;  %v684_v42 = vmul.f32 %v515_v62, %v515_v62 }
 0x105   : > { %v700_v28 = vsel %vm522_vm0, %v680_v20, 0.0  ;;  %536 = vst.msk [vmem:[%s1119_s5 + $0x68] sm:$0xff] %vm522_vm0, %v519_v38  ;;  %v685_v46 = vmul.f32 %v1122_v25, %v1122_v25  ;;  %v706_v47 = vsel %vm522_vm0, %v683_v37, 0.0  ;;  %v655_v48 = vsel %vm522_vm0, %v515_v62, 0.0 }
 0x106   : > { %v650_v30 = vadd.f32 %v649_v26, %v648_v22  ;;  %v701_v31 = vadd.f32 %v700_v28, %v699_v21  ;;  %v657_v51 = vsel %vm522_vm0, %v1122_v25, 0.0  ;;  %v686_v32 = vmul.f32 %v1143_v43, %v1143_v43 }
 0x107   : > { %v708_v52 = vsel %vm522_vm0, %v684_v42, 0.0  ;;  %v710_v55 = vsel %vm522_vm0, %v685_v46, 0.0  ;;  %v659_v56 = vsel %vm522_vm0, %v1143_v43, 0.0  ;;  %v687_v57 = vmul.f32 %v518_v33, %v518_v33 }
 0x108   : > { %v703_v39 = vadd.f32 %v702_v35, %v701_v31  ;;  %v652_v40 = vadd.f32 %v651_v36, %v650_v30  ;;  %v712_v60 = vsel %vm522_vm0, %v686_v32, 0.0  ;;  %v661_v61 = vsel %vm522_vm0, %v518_v33, 0.0 }
 0x109   : > { %v688_v25 = vmul.f32 %v519_v38, %v519_v38  ;;  %v689_v0 = vmul.f32 %v1168_v9, %v1168_v9  ;;  %v714_v1 = vsel %vm522_vm0, %v687_v57, 0.0  ;;  %v663_v2 = vsel %vm522_vm0, %v519_v38, 0.0 }
 0x10a   : > { %v654_v44 = vadd.f32 %v653_v41, %v652_v40  ;;  %v705_v45 = vadd.f32 %v704_v16, %v703_v39  ;;  %v665_v43 = vsel %vm522_vm0, %v1168_v9, 0.0  ;;  %v690_v5 = vmul.f32 %v521_v34, %v521_v34 }
 0x10b   : > { %v716_v6 = vsel %vm522_vm0, %v688_v25, 0.0  ;;  %v718_v10 = vsel %vm522_vm0, %v689_v0, 0.0  ;;  %v667_v11 = vsel %vm522_vm0, %v521_v34, 0.0  ;;  %v733_v26 = vlaneseq }
 0x10c   : > { %v656_v49 = vadd.f32 %v655_v48, %v654_v44  ;;  %v707_v50 = vadd.f32 %v706_v47, %v705_v45  ;;  %v720_v14 = vsel %vm522_vm0, %v690_v5, 0.0 }
 0x10d   : > { %v734_v28 = vshrl.u32 %v733_v26, 7 }
 0x10e   : > { %v658_v53 = vadd.f32 %v657_v51, %v656_v49  ;;  %v709_v54 = vadd.f32 %v708_v52, %v707_v50 }
 0x10f   : > { %v735_v30 = vsub.s32 0, %v734_v28 }
 0x110   : > { %v711_v58 = vadd.f32 %v710_v55, %v709_v54  ;;  %v660_v59 = vadd.f32 %v659_v56, %v658_v53 }
 0x112   : > { %v662_v62 = vadd.f32 %v661_v61, %v660_v59  ;;  %v713_v63 = vadd.f32 %v712_v60, %v711_v58 }
 0x114   : > { %v715_v3 = vadd.f32 %v714_v1, %v713_v63  ;;  %v664_v4 = vadd.f32 %v663_v2, %v662_v62 }
 0x116   : > { %v666_v7 = vadd.f32 %v665_v43, %v664_v4  ;;  %v717_v8 = vadd.f32 %v716_v6, %v715_v3 }
 0x118   : > { %v668_v12 = vadd.f32 %v667_v11, %v666_v7  ;;  %v719_v13 = vadd.f32 %v718_v10, %v717_v8 }
 0x11a   : > { %v721_v15 = vadd.f32 %v720_v14, %v719_v13  ;;  %v669_v22 = vrot.slane %v668_v12, 4 }
 0x11c   : > { %v722_v17 = vrot.slane %v721_v15, 4  ;;  %v670_v23 = vadd.f32 %v669_v22, %v668_v12 }
 0x11e   : > { %v723_v18 = vadd.f32 %v722_v17, %v721_v15  ;;  %v671_v24 = vrot.slane %v670_v23, 2 }
 0x120   : > { %v724_v19 = vrot.slane %v723_v18, 2  ;;  %v672_v27 = vadd.f32 %v671_v24, %v670_v23 }
 0x122   : > { %v725_v20 = vadd.f32 %v724_v19, %v723_v18  ;;  %v673_v29 = vrot.slane %v672_v27, 1 }
 0x124   : > { %v726_v9 = vrot.slane %v725_v20, 1  ;;  %v674_v31 = vadd.f32 %v673_v29, %v672_v27 }
 0x126   : > { %v727_v21 = vadd.f32 %v726_v9, %v725_v20 }
 0x128   : > { %729 = vrot.lane.b32.xlu0 %v727_v21, %s1035_s6 }
 0x19a   : > { %v730_v33 = vpop.permute.xlu0 %729 }
 0x19b   : > { %v732_v34 = vsel %vm522_vm0, %v674_v31, %v730_v33 }
 0x19c   : > { %v736_v35 = vrot.slane %v732_v34, %v735_v30 }
 0x19e   : > { %738 = vst.msk [vmem:[%s271_s10] sm:$0xff] %vm737_vm1, %v736_v35 }
 0x19f PF: > { %s15_s17 = sadd.s32 1, %s1033_s17   ;;  %s1242_s15 = smov %s1029_s16 }
 0x1a0   : > { %p12_p5 = scmp.ge.s32.totalorder %s15_s17, 6   ;;  %s1243_s16 = smov %s1245_s18 }
 0x1a2   :  { %14 = sbr.rel (!%p12_p5) target bundleno = 2 (0x2), region = 77 }

// kernel: generator_forward_pallas.15
= control target key start
LH: loop header
LB: loop body
LE: loop exit
PB: predicated region body
PF: predicated region fallthrough
CT: control target
= control target key end

     0   :  { %s1255_s12 = smov 0   ;;  %s1257_s13 = smov 0   ;;  %s1418_s0 = inlined_call_operand.vmem [shape: bf16[4,512,64], index: 0, kind: input, shape index: {}]   ;;  %s1419_s1 = inlined_call_operand.vmem [shape: bf16[4,64,128], index: 1, kind: input, shape index: {}]   ;;  %s1420_s2 = inlined_call_operand.vmem [shape: f32[1,128], index: 2, kind: input, shape index: {}]   ;;  %s1421_s3 = inlined_call_operand.vmem [shape: f32[4,512,128], index: 3, kind: output, shape index: {}]  }
   0x1   :  { %s1259_s14 = smov 0   ;;  %s1261_s15 = smov 0  }
   0x2   :  { %s1263_s16 = smov 0  }
   0x3 LB: > { %s22_s17 = sadd.s32 1, %s1225_s14  ;;  %s25_s18 = sadd.s32 1, %s1229_s15  ;;  %s1233_s16 = sphi %s1263_s16, %s13_s16   ;;  %s1229_s15 = sphi %s1261_s15, %s1425_s15   ;;  %s1225_s14 = sphi %s1259_s14, %s1424_s14   ;;  %s1221_s13 = sphi %s1257_s13, %s1423_s13   ;;  %s1217_s12 = sphi %s1255_s12, %s1422_s12  }
   0x4   : > { %p23_p0 = scmp.ge.s32.totalorder %s22_s17, 2  ;;  %p890_p1 = scmp.ge.s32.totalorder %s1233_s16, 1 }
   0x5   : > { %p168_p2 = scmp.lt.s32.totalorder %s1233_s16, 9 }
   0x6   : > { %s1427_s17 = smov (%p23_p0, %s22_s17), 0  ;;  %s1429_s18 = smov (!%p23_p0, %s25_s18), %s1229_s15 }
   0x7   : > { %p169_p3 = pnand %p890_p1, %p168_p2  ;;  %p27_p4 = scmp.ge.s32.totalorder %s1429_s18, 4 }
   0x8   : > { %s891_s19 = sshll.u32 (!%p169_p3), %s1217_s12, 5  ;;  %p206_p5 = scmp.lt.s32.totalorder (!%p169_p3), %s1221_s13, 3 }
   0x9   : > { %s1431_s18 = smov (%p27_p4, %s1429_s18), 0  ;;  %172 = sbr.rel (%p169_p3) target bundleno = 316 (0x13c), region = 32 }
   0xa   : > { %p208_p6 = scmp.lt.s32.totalorder (!%p169_p3), %s891_s19, 63 }
   0xe   : > { %s1433_s13 = smov (!%p206_p5, %s1221_s13), 3  ;;  %s1435_s19 = smov (!%p208_p6, %s891_s19), 63  ;;  %vm382_vm0 = vcmask 523264   ;;  %v1331_v20 = vld [vmem:[%s1420_s2] ss:$0 sm:$0xff] }
   0xf   : > { %s892_s20 = sshll.u32 %s1433_s13, 6  ;;  %s938_s21 = sshll.u32 %s1433_s13, 5 }
  0x10   : > { %s1285_s22 = sadd.s32 %s892_s20, %s1435_s19  ;;  %s219_s25 = scalar_lea.vmem %s1419_s1, %s938_s21 }
  0x11   : > { %s893_s26 = sshll.u32 %s1285_s22, 2  ;;  %v1047_v0 = vld [vmem:[%s219_s25 + $0x18] sm:$0xff]   ;;  %v1048_v1 = vld [vmem:[%s219_s25 + $0x10] sm:$0xff]   ;;  %v1049_v2 = vld [vmem:[%s219_s25 + $0x8] sm:$0xff]   ;;  %s898_s5 = sshll.u32 %s1285_s22, 3 }
  0x12   : > { %s1294_s29 = scalar_lea.vmem %s1418_s0, %s893_s26  ;;  %959 = vmatprep.subr.bf16.mxu0 %v1047_v0  ;;  %999 = vmatprep.subr.bf16.mxu1 %v1047_v0  ;;  %v1050_v5 = vld [vmem:[%s219_s25] sm:$0xff]   ;;  %s1359_s8 = scalar_lea.vmem %s1421_s3, %s898_s5 }
  0x13   : > { %960 = vmatpush3.bf16.msra.mxu0 %v1047_v0  ;;  %1003 = vmatpush3.bf16.msra.mxu1 %v1047_v0  ;;  %v1051_v3 = vld [vmem:[%s1294_s29] sm:$0xff]   ;;  %v1053_v6 = vld [vmem:[%s1294_s29 + $0x8] sm:$0xff]   ;;  %v1055_v8 = vld [vmem:[%s1294_s29 + $0x10] sm:$0xff]  }
  0x14   : > { %961 = vmatprep.subr.bf16.mxu0 %v1048_v1  ;;  %1000 = vmatprep.subr.bf16.mxu1 %v1048_v1  ;;  %v1052_v4 = vld [vmem:[%s1294_s29 + $0x40] sm:$0xff]   ;;  %v1054_v7 = vld [vmem:[%s1294_s29 + $0x48] sm:$0xff]   ;;  %v1056_v9 = vld [vmem:[%s1294_s29 + $0x50] sm:$0xff]  }
  0x15   : > { %967 = vmatprep.mubr.msk.bf16.mxu0 %vm382_vm0, %v1051_v3  ;;  %983 = vmatprep.mubr.msk.bf16.mxu1 %vm382_vm0, %v1052_v4  ;;  %v1057_v10 = vld [vmem:[%s1294_s29 + $0x18] sm:$0xff]   ;;  %v1059_v12 = vld [vmem:[%s1294_s29 + $0x20] sm:$0xff]   ;;  %v1061_v14 = vld [vmem:[%s1294_s29 + $0x28] sm:$0xff]  }
  0x16   : > { %v1058_v11 = vld [vmem:[%s1294_s29 + $0x58] sm:$0xff]   ;;  %v1060_v13 = vld [vmem:[%s1294_s29 + $0x60] sm:$0xff]   ;;  %v1062_v15 = vld [vmem:[%s1294_s29 + $0x68] sm:$0xff]  }
  0x17   : > { %962 = vmatpush3.bf16.msra.mxu0 %v1048_v1  ;;  %1004 = vmatpush3.bf16.msra.mxu1 %v1048_v1  ;;  %v1063_v16 = vld [vmem:[%s1294_s29 + $0x30] sm:$0xff]   ;;  %v1065_v18 = vld [vmem:[%s1294_s29 + $0x38] sm:$0xff]  }
  0x18   : > { %963 = vmatprep.subr.bf16.mxu0 %v1049_v2  ;;  %1001 = vmatprep.subr.bf16.mxu1 %v1049_v2  ;;  %v1064_v17 = vld [vmem:[%s1294_s29 + $0x70] sm:$0xff]   ;;  %v1066_v19 = vld [vmem:[%s1294_s29 + $0x78] sm:$0xff]  }
  0x1b   : > { %964 = vmatpush3.bf16.msra.mxu0 %v1049_v2  ;;  %1005 = vmatpush3.bf16.msra.mxu1 %v1049_v2 }
  0x1c   : > { %965 = vmatprep.subr.bf16.mxu0 %v1050_v5  ;;  %1002 = vmatprep.subr.bf16.mxu1 %v1050_v5 }
  0x1f   : > { %966 = vmatpush3.bf16.msra.mxu0 %v1050_v5  ;;  %1006 = vmatpush3.bf16.msra.mxu1 %v1050_v5 }
  0x22   : > { %968 = vmatmul.mubr.msk.bf16.vlgmr.msra.gmra.mxu0 %vm382_vm0, %v1053_v6  ;;  %984 = vmatmul.mubr.msk.bf16.vlgmr.msra.gmra.mxu1 %vm382_vm0, %v1054_v7 }
  0x23   : > { %971 = vmatprep.mubr.msk.bf16.mxu0 %vm382_vm0, %v1055_v8  ;;  %987 = vmatprep.mubr.msk.bf16.mxu1 %vm382_vm0, %v1056_v9 }
  0x2a   : > { %972 = vmatmul.mubr.msk.bf16.gmra.mxu0 %vm382_vm0, %v1057_v10  ;;  %988 = vmatmul.mubr.msk.bf16.gmra.mxu1 %vm382_vm0, %v1058_v11 }
  0x2b   : > { %975 = vmatprep.mubr.msk.bf16.mxu0 %vm382_vm0, %v1059_v12  ;;  %991 = vmatprep.mubr.msk.bf16.mxu1 %vm382_vm0, %v1060_v13 }
  0x32   : > { %976 = vmatmul.mubr.msk.bf16.gmra.mxu0 %vm382_vm0, %v1061_v14  ;;  %992 = vmatmul.mubr.msk.bf16.gmra.mxu1 %vm382_vm0, %v1062_v15 }
  0x33   : > { %979 = vmatprep.mubr.msk.bf16.mxu0 %vm382_vm0, %v1063_v16  ;;  %995 = vmatprep.mubr.msk.bf16.mxu1 %vm382_vm0, %v1064_v17 }
  0x3a   : > { %980 = vmatmul.mubr.msk.bf16.gmra.mxu0 %vm382_vm0, %v1065_v18  ;;  %996 = vmatmul.mubr.msk.bf16.gmra.mxu1 %vm382_vm0, %v1066_v19 }
  0xe2   : > { %v969_v21 = vpop.f32.mrf.mxu0  ;;  %v985_v22 = vpop.f32.mrf.mxu1 }
  0xe3   : > { %v474_v23 = vadd.f32 %v969_v21, %v1331_v20  ;;  %v538_v24 = vadd.f32 %v985_v22, %v1331_v20 }
  0xe4   : > { %v465_v25 = vpop.f32.mrf.mxu0  ;;  %v529_v26 = vpop.f32.mrf.mxu1 }
  0xe5   : > { %v594_v27 = vsub.f32 0.0, %v474_v23  ;;  %v610_v28 = vsub.f32 0.0, %v538_v24  ;;  %v466_v29 = vadd.f32 %v1331_v20, %v465_v25  ;;  %v530_v30 = vadd.f32 %v1331_v20, %v529_v26 }
  0xe6   : > { %v970_v31 = vpop.f32.mrf.mxu0  ;;  %v986_v32 = vpop.f32.mrf.mxu1 }
  0xe7   : > { %v628_v33 = vmul.f32 1.442695, %v594_v27  ;;  %v660_v34 = vmul.f32 1.442695, %v610_v28  ;;  %v592_v35 = vsub.f32 0.0, %v466_v29  ;;  %v608_v36 = vsub.f32 0.0, %v530_v30 }
  0xe8   : > { %v477_v37 = vadd.f32 %v970_v31, %v1331_v20  ;;  %v541_v38 = vadd.f32 %v986_v32, %v1331_v20  ;;  %v468_v39 = vpop.f32.mrf.mxu0  ;;  %v532_v40 = vpop.f32.mrf.mxu1 }
  0xe9   : > { %1067 = vpow2.f32 %v628_v33  ;;  %v624_v41 = vmul.f32 1.442695, %v592_v35  ;;  %v656_v42 = vmul.f32 1.442695, %v608_v36  ;;  %v469_v43 = vadd.f32 %v1331_v20, %v468_v39 }
  0xea   : > { %1069 = vpow2.f32 %v660_v34  ;;  %v595_v44 = vsub.f32 0.0, %v477_v37  ;;  %v611_v45 = vsub.f32 0.0, %v541_v38  ;;  %v533_v46 = vadd.f32 %v1331_v20, %v532_v40  ;;  %v973_v47 = vpop.f32.mrf.mxu0  ;;  %v989_v48 = vpop.f32.mrf.mxu1 }
  0xeb   : > { %1071 = vpow2.f32 %v624_v41  ;;  %v593_v49 = vsub.f32 0.0, %v469_v43  ;;  %v490_v50 = vadd.f32 %v973_v47, %v1331_v20  ;;  %v554_v51 = vadd.f32 %v989_v48, %v1331_v20 }
  0xec   : > { %1073 = vpow2.f32 %v656_v42  ;;  %v630_v52 = vmul.f32 1.442695, %v595_v44  ;;  %v662_v53 = vmul.f32 1.442695, %v611_v45  ;;  %v609_v54 = vsub.f32 0.0, %v533_v46  ;;  %v481_v55 = vpop.f32.mrf.mxu0  ;;  %v545_v56 = vpop.f32.mrf.mxu1 }
  0xed   : > { %v626_v57 = vmul.f32 1.442695, %v593_v49  ;;  %v598_v58 = vsub.f32 0.0, %v490_v50  ;;  %v614_v59 = vsub.f32 0.0, %v554_v51  ;;  %v482_v60 = vadd.f32 %v1331_v20, %v481_v55 }
  0xee   : > { %1075 = vpow2.f32 %v630_v52  ;;  %v658_v61 = vmul.f32 1.442695, %v609_v54  ;;  %v546_v62 = vadd.f32 %v1331_v20, %v545_v56  ;;  %v974_v63 = vpop.f32.mrf.mxu0  ;;  %v990_v0 = vpop.f32.mrf.mxu1 }
  0xef   : > { %1077 = vpow2.f32 %v662_v53  ;;  %v636_v1 = vmul.f32 1.442695, %v598_v58  ;;  %v668_v2 = vmul.f32 1.442695, %v614_v59  ;;  %v596_v3 = vsub.f32 0.0, %v482_v60 }
  0xf0   : > { %1079 = vpow2.f32 %v626_v57  ;;  %v612_v4 = vsub.f32 0.0, %v546_v62  ;;  %v493_v5 = vadd.f32 %v974_v63, %v1331_v20  ;;  %v557_v6 = vadd.f32 %v990_v0, %v1331_v20  ;;  %v484_v7 = vpop.f32.mrf.mxu0  ;;  %v548_v8 = vpop.f32.mrf.mxu1 }
  0xf1   : > { %1081 = vpow2.f32 %v658_v61  ;;  %v632_v9 = vmul.f32 1.442695, %v596_v3  ;;  %v485_v10 = vadd.f32 %v1331_v20, %v484_v7  ;;  %v549_v11 = vadd.f32 %v1331_v20, %v548_v8 }
  0xf2   : > { %1083 = vpow2.f32 %v636_v1  ;;  %v664_v12 = vmul.f32 1.442695, %v612_v4  ;;  %v599_v13 = vsub.f32 0.0, %v493_v5  ;;  %v615_v14 = vsub.f32 0.0, %v557_v6  ;;  %v977_v15 = vpop.f32.mrf.mxu0  ;;  %v993_v16 = vpop.f32.mrf.mxu1 }
  0xf3   : > { %1085 = vpow2.f32 %v668_v2  ;;  %v597_v17 = vsub.f32 0.0, %v485_v10  ;;  %v613_v24 = vsub.f32 0.0, %v549_v11  ;;  %v506_v37 = vadd.f32 %v977_v15, %v1331_v20 }
  0xf4   : > { %1087 = vpow2.f32 %v632_v9  ;;  %v638_v18 = vmul.f32 1.442695, %v599_v13  ;;  %v670_v19 = vmul.f32 1.442695, %v615_v14  ;;  %v497_v21 = vpop.f32.mrf.mxu0  ;;  %v561_v22 = vpop.f32.mrf.mxu1  ;;  %v570_v39 = vadd.f32 %v993_v16, %v1331_v20 }
  0xf5   : > { %1089 = vpow2.f32 %v664_v12  ;;  %v634_v23 = vmul.f32 1.442695, %v597_v17  ;;  %v666_v34 = vmul.f32 1.442695, %v613_v24  ;;  %v602_v48 = vsub.f32 0.0, %v506_v37 }
  0xf6   : > { %v1068_v25 = vpop.eup %1067  ;;  %1091 = vpow2.f32 %v638_v18  ;;  %v978_v26 = vpop.f32.mrf.mxu0  ;;  %v618_v51 = vsub.f32 0.0, %v570_v39  ;;  %v498_v52 = vadd.f32 %v1331_v20, %v497_v21  ;;  %v562_v55 = vadd.f32 %v1331_v20, %v561_v22 }
  0xf7   : > { %v1070_v27 = vpop.eup %1069  ;;  %v690_v28 = vadd.f32 1.0, %v1068_v25  ;;  %1093 = vpow2.f32 %v670_v19  ;;  %v994_v31 = vpop.f32.mrf.mxu1  ;;  %v509_v59 = vadd.f32 %v978_v26, %v1331_v20  ;;  %v644_v63 = vmul.f32 1.442695, %v602_v48 }
  0xf8   : > { %v1072_v29 = vpop.eup %1071  ;;  %v706_v30 = vadd.f32 1.0, %v1070_v27  ;;  %1095 = vpow2.f32 %v634_v23  ;;  %v500_v35 = vpop.f32.mrf.mxu0  ;;  %v573_v0 = vadd.f32 %v994_v31, %v1331_v20  ;;  %v676_v3 = vmul.f32 1.442695, %v618_v51 }
  0xf9   : > { %v1074_v32 = vpop.eup %1073  ;;  %1097 = vrcp.f32 %v690_v28  ;;  %v688_v33 = vadd.f32 1.0, %v1072_v29  ;;  %v564_v42 = vpop.f32.mrf.mxu1  ;;  %v600_v4 = vsub.f32 0.0, %v498_v52  ;;  %v616_v7 = vsub.f32 0.0, %v562_v55 }
  0xfa   : > { %1099 = vrcp.f32 %v706_v30  ;;  %v704_v36 = vadd.f32 1.0, %v1074_v32  ;;  %v981_v45 = vpop.f32.mrf.mxu0  ;;  %v501_v8 = vadd.f32 %v1331_v20, %v500_v35  ;;  %v603_v12 = vsub.f32 0.0, %v509_v59 }
  0xfb   : > { %v1076_v38 = vpop.eup %1075  ;;  %1101 = vrcp.f32 %v688_v33  ;;  %v997_v56 = vpop.f32.mrf.mxu1  ;;  %v565_v13 = vadd.f32 %v1331_v20, %v564_v42  ;;  %v619_v17 = vsub.f32 0.0, %v573_v0  ;;  %v522_v18 = vadd.f32 %v981_v45, %v1331_v20 }
  0xfc   : > { %v1078_v40 = vpop.eup %1077  ;;  %1103 = vrcp.f32 %v704_v36  ;;  %v691_v41 = vadd.f32 1.0, %v1076_v38  ;;  %v513_v60 = vpop.f32.mrf.mxu0  ;;  %v640_v21 = vmul.f32 1.442695, %v600_v4  ;;  %v586_v22 = vadd.f32 %v997_v56, %v1331_v20 }
  0xfd   : > { %v1080_v43 = vpop.eup %1079  ;;  %v707_v44 = vadd.f32 1.0, %v1078_v40  ;;  %1105 = vpow2.f32 %v666_v34  ;;  %v577_v9 = vpop.f32.mrf.mxu1  ;;  %v672_v24 = vmul.f32 1.442695, %v616_v7  ;;  %v601_v25 = vsub.f32 0.0, %v501_v8 }
  0xfe   : > { %v1082_v46 = vpop.eup %1081  ;;  %1107 = vrcp.f32 %v691_v41  ;;  %v689_v47 = vadd.f32 1.0, %v1080_v43  ;;  %v982_v14 = vpop.f32.mrf.mxu0  ;;  %v514_v26 = vadd.f32 %v1331_v20, %v513_v60  ;;  %v646_v29 = vmul.f32 1.442695, %v603_v12 }
  0xff   : > { %v1084_v49 = vpop.eup %1083  ;;  %1109 = vrcp.f32 %v707_v44  ;;  %v705_v50 = vadd.f32 1.0, %v1082_v46  ;;  %v998_v27 = vpop.f32.mrf.mxu1  ;;  %v617_v30 = vsub.f32 0.0, %v565_v13  ;;  %v578_v31 = vadd.f32 %v1331_v20, %v577_v9 }
 0x100   : > { %v1086_v53 = vpop.eup %1085  ;;  %1111 = vrcp.f32 %v689_v47  ;;  %v694_v54 = vadd.f32 1.0, %v1084_v49  ;;  %v516_v32 = vpop.f32.mrf.mxu0  ;;  %v678_v34 = vmul.f32 1.442695, %v619_v17  ;;  %v606_v35 = vsub.f32 0.0, %v522_v18 }
 0x101   : > { %v1088_v57 = vpop.eup %1087  ;;  %1113 = vrcp.f32 %v705_v50  ;;  %v710_v58 = vadd.f32 1.0, %v1086_v53  ;;  %v525_v36 = vadd.f32 %v982_v14, %v1331_v20  ;;  %v622_v39 = vsub.f32 0.0, %v586_v22  ;;  %v580_v51 = vpop.f32.mrf.mxu1 }
 0x102   : > { %v1090_v61 = vpop.eup %1089  ;;  %1115 = vrcp.f32 %v694_v54  ;;  %v692_v62 = vadd.f32 1.0, %v1088_v57  ;;  %v589_v40 = vadd.f32 %v998_v27, %v1331_v20  ;;  %v642_v42 = vmul.f32 1.442695, %v601_v25 }
 0x103   : > { %v1092_v1 = vpop.eup %1091  ;;  %1117 = vrcp.f32 %v710_v58  ;;  %v708_v2 = vadd.f32 1.0, %v1090_v61  ;;  %v604_v43 = vsub.f32 0.0, %v514_v26  ;;  %v517_v44 = vadd.f32 %v1331_v20, %v516_v32 }
 0x104   : > { %v1094_v5 = vpop.eup %1093  ;;  %1119 = vrcp.f32 %v692_v62  ;;  %v695_v6 = vadd.f32 1.0, %v1092_v1  ;;  %v674_v46 = vmul.f32 1.442695, %v617_v30  ;;  %v620_v47 = vsub.f32 0.0, %v578_v31 }
 0x105   : > { %v1096_v10 = vpop.eup %1095  ;;  %1121 = vrcp.f32 %v708_v2  ;;  %v711_v11 = vadd.f32 1.0, %v1094_v5  ;;  %v652_v49 = vmul.f32 1.442695, %v606_v35  ;;  %v607_v50 = vsub.f32 0.0, %v525_v36 }
 0x106   : > { %v1098_v15 = vpop.eup %1097  ;;  %1123 = vrcp.f32 %v695_v6  ;;  %v693_v16 = vadd.f32 1.0, %v1096_v10  ;;  %v684_v53 = vmul.f32 1.442695, %v622_v39  ;;  %v623_v54 = vsub.f32 0.0, %v589_v40 }
 0x107   : > { %v1100_v19 = vpop.eup %1099  ;;  %754 = vst [vmem:[%s1359_s8 + $0x10] sm:$0xff] %v1098_v15  ;;  %1125 = vrcp.f32 %v711_v11  ;;  %v648_v56 = vmul.f32 1.442695, %v604_v43  ;;  %v605_v57 = vsub.f32 0.0, %v517_v44  ;;  %v680_v59 = vmul.f32 1.442695, %v620_v47 }
 0x108   : > { %v1102_v23 = vpop.eup %1101  ;;  %770 = vst [vmem:[%s1359_s8 + $0x90] sm:$0xff] %v1100_v19  ;;  %1127 = vrcp.f32 %v693_v16  ;;  %v581_v60 = vadd.f32 %v1331_v20, %v580_v51  ;;  %v654_v62 = vmul.f32 1.442695, %v607_v50  ;;  %v686_v0 = vmul.f32 1.442695, %v623_v54 }
 0x109   : > { %v1104_v28 = vpop.eup %1103  ;;  %752 = vst [vmem:[%s1359_s8] sm:$0xff] %v1102_v23  ;;  %1129 = vpow2.f32 %v644_v63  ;;  %v650_v2 = vmul.f32 1.442695, %v605_v57 }
 0x10a   : > { %v1106_v33 = vpop.eup %1105  ;;  %768 = vst [vmem:[%s1359_s8 + $0x80] sm:$0xff] %v1104_v28  ;;  %1131 = vpow2.f32 %v676_v3  ;;  %v621_v4 = vsub.f32 0.0, %v581_v60 }
 0x10b   : > { %v1108_v37 = vpop.eup %1107  ;;  %v709_v38 = vadd.f32 1.0, %v1106_v33  ;;  %1133 = vpow2.f32 %v640_v21 }
 0x10c   : > { %v1110_v41 = vpop.eup %1109  ;;  %755 = vst [vmem:[%s1359_s8 + $0x18] sm:$0xff] %v1108_v37  ;;  %1135 = vpow2.f32 %v672_v24  ;;  %v682_v11 = vmul.f32 1.442695, %v621_v4 }
 0x10d   : > { %v1112_v45 = vpop.eup %1111  ;;  %771 = vst [vmem:[%s1359_s8 + $0x98] sm:$0xff] %v1110_v41  ;;  %1137 = vrcp.f32 %v709_v38 }
 0x10e   : > { %v1114_v48 = vpop.eup %1113  ;;  %753 = vst [vmem:[%s1359_s8 + $0x8] sm:$0xff] %v1112_v45  ;;  %1139 = vpow2.f32 %v646_v29 }
 0x10f   : > { %v1116_v52 = vpop.eup %1115  ;;  %769 = vst [vmem:[%s1359_s8 + $0x88] sm:$0xff] %v1114_v48  ;;  %1141 = vpow2.f32 %v678_v34 }
 0x110   : > { %v1118_v55 = vpop.eup %1117  ;;  %758 = vst [vmem:[%s1359_s8 + $0x30] sm:$0xff] %v1116_v52  ;;  %1143 = vpow2.f32 %v642_v42 }
 0x111   : > { %v1120_v58 = vpop.eup %1119  ;;  %774 = vst [vmem:[%s1359_s8 + $0xb0] sm:$0xff] %v1118_v55  ;;  %1145 = vpow2.f32 %v674_v46 }
 0x112   : > { %v1122_v61 = vpop.eup %1121  ;;  %756 = vst [vmem:[%s1359_s8 + $0x20] sm:$0xff] %v1120_v58  ;;  %1147 = vpow2.f32 %v652_v49 }
 0x113   : > { %v1124_v63 = vpop.eup %1123  ;;  %772 = vst [vmem:[%s1359_s8 + $0xa0] sm:$0xff] %v1122_v61  ;;  %1149 = vpow2.f32 %v684_v53 }
 0x114   : > { %v1126_v1 = vpop.eup %1125  ;;  %759 = vst [vmem:[%s1359_s8 + $0x38] sm:$0xff] %v1124_v63  ;;  %1151 = vpow2.f32 %v648_v56 }
 0x115   : > { %v1128_v3 = vpop.eup %1127  ;;  %775 = vst [vmem:[%s1359_s8 + $0xb8] sm:$0xff] %v1126_v1  ;;  %1153 = vpow2.f32 %v680_v59 }
 0x116   : > { %v1130_v5 = vpop.eup %1129  ;;  %757 = vst [vmem:[%s1359_s8 + $0x28] sm:$0xff] %v1128_v3  ;;  %1155 = vpow2.f32 %v654_v62 }
 0x117   : > { %v1132_v20 = vpop.eup %1131  ;;  %v698_v6 = vadd.f32 1.0, %v1130_v5  ;;  %1157 = vpow2.f32 %v686_v0 }
 0x118   : > { %v1134_v7 = vpop.eup %1133  ;;  %v714_v8 = vadd.f32 1.0, %v1132_v20  ;;  %1159 = vpow2.f32 %v650_v2 }
 0x119   : > { %v1136_v9 = vpop.eup %1135  ;;  %1161 = vrcp.f32 %v698_v6  ;;  %v696_v10 = vadd.f32 1.0, %v1134_v7 }
 0x11a   : > { %v1138_v12 = vpop.eup %1137  ;;  %1163 = vrcp.f32 %v714_v8  ;;  %v712_v13 = vadd.f32 1.0, %v1136_v9 }
 0x11b   : > { %v1140_v14 = vpop.eup %1139  ;;  %773 = vst [vmem:[%s1359_s8 + $0xa8] sm:$0xff] %v1138_v12  ;;  %1165 = vrcp.f32 %v696_v10 }
 0x11c   : > { %v1142_v15 = vpop.eup %1141  ;;  %1167 = vrcp.f32 %v712_v13  ;;  %v699_v16 = vadd.f32 1.0, %v1140_v14 }
 0x11d   : > { %v1144_v17 = vpop.eup %1143  ;;  %v715_v18 = vadd.f32 1.0, %v1142_v15  ;;  %1169 = vpow2.f32 %v682_v11 }
 0x11e   : > { %v1146_v19 = vpop.eup %1145  ;;  %1171 = vrcp.f32 %v699_v16  ;;  %v697_v21 = vadd.f32 1.0, %v1144_v17 }
 0x11f   : > { %v1148_v22 = vpop.eup %1147  ;;  %1173 = vrcp.f32 %v715_v18  ;;  %v713_v23 = vadd.f32 1.0, %v1146_v19 }
 0x120   : > { %v1150_v24 = vpop.eup %1149  ;;  %1175 = vrcp.f32 %v697_v21  ;;  %v702_v25 = vadd.f32 1.0, %v1148_v22 }
 0x121   : > { %v1152_v26 = vpop.eup %1151  ;;  %1177 = vrcp.f32 %v713_v23  ;;  %v718_v27 = vadd.f32 1.0, %v1150_v24 }
 0x122   : > { %v1154_v28 = vpop.eup %1153  ;;  %1179 = vrcp.f32 %v702_v25  ;;  %v700_v29 = vadd.f32 1.0, %v1152_v26 }
 0x123   : > { %v1156_v30 = vpop.eup %1155  ;;  %1181 = vrcp.f32 %v718_v27  ;;  %v716_v31 = vadd.f32 1.0, %v1154_v28 }
 0x124   : > { %v1158_v32 = vpop.eup %1157  ;;  %1183 = vrcp.f32 %v700_v29  ;;  %v703_v33 = vadd.f32 1.0, %v1156_v30 }
 0x125   : > { %v1160_v34 = vpop.eup %1159  ;;  %1185 = vrcp.f32 %v716_v31  ;;  %v719_v35 = vadd.f32 1.0, %v1158_v32 }
 0x126   : > { %v1162_v36 = vpop.eup %1161  ;;  %1187 = vrcp.f32 %v703_v33  ;;  %v701_v37 = vadd.f32 1.0, %v1160_v34 }
 0x127   : > { %v1164_v38 = vpop.eup %1163  ;;  %762 = vst [vmem:[%s1359_s8 + $0x50] sm:$0xff] %v1162_v36  ;;  %1189 = vrcp.f32 %v719_v35 }
 0x128   : > { %v1166_v39 = vpop.eup %1165  ;;  %778 = vst [vmem:[%s1359_s8 + $0xd0] sm:$0xff] %v1164_v38  ;;  %1191 = vrcp.f32 %v701_v37 }
 0x129   : > { %v1168_v40 = vpop.eup %1167  ;;  %760 = vst [vmem:[%s1359_s8 + $0x40] sm:$0xff] %v1166_v39 }
 0x12a   : > { %v1170_v41 = vpop.eup %1169  ;;  %776 = vst [vmem:[%s1359_s8 + $0xc0] sm:$0xff] %v1168_v40 }
 0x12b   : > { %v1172_v42 = vpop.eup %1171  ;;  %v717_v43 = vadd.f32 1.0, %v1170_v41 }
 0x12c   : > { %v1174_v44 = vpop.eup %1173  ;;  %763 = vst [vmem:[%s1359_s8 + $0x58] sm:$0xff] %v1172_v42 }
 0x12d   : > { %v1176_v45 = vpop.eup %1175  ;;  %779 = vst [vmem:[%s1359_s8 + $0xd8] sm:$0xff] %v1174_v44  ;;  %1193 = vrcp.f32 %v717_v43 }
 0x12e   : > { %v1178_v46 = vpop.eup %1177  ;;  %761 = vst [vmem:[%s1359_s8 + $0x48] sm:$0xff] %v1176_v45 }
 0x12f   : > { %v1180_v47 = vpop.eup %1179  ;;  %777 = vst [vmem:[%s1359_s8 + $0xc8] sm:$0xff] %v1178_v46 }
 0x130   : > { %v1182_v48 = vpop.eup %1181  ;;  %766 = vst [vmem:[%s1359_s8 + $0x70] sm:$0xff] %v1180_v47 }
 0x131   : > { %v1184_v49 = vpop.eup %1183  ;;  %782 = vst [vmem:[%s1359_s8 + $0xf0] sm:$0xff] %v1182_v48 }
 0x132   : > { %v1186_v50 = vpop.eup %1185  ;;  %764 = vst [vmem:[%s1359_s8 + $0x60] sm:$0xff] %v1184_v49 }
 0x133   : > { %v1188_v51 = vpop.eup %1187  ;;  %780 = vst [vmem:[%s1359_s8 + $0xe0] sm:$0xff] %v1186_v50 }
 0x134   : > { %v1190_v52 = vpop.eup %1189  ;;  %767 = vst [vmem:[%s1359_s8 + $0x78] sm:$0xff] %v1188_v51 }
 0x135   : > { %v1192_v53 = vpop.eup %1191  ;;  %783 = vst [vmem:[%s1359_s8 + $0xf8] sm:$0xff] %v1190_v52 }
 0x136   : > { %765 = vst [vmem:[%s1359_s8 + $0x68] sm:$0xff] %v1192_v53 }
 0x13a   : > { %v1194_v54 = vpop.eup %1193 }
 0x13b   : > { %781 = vst [vmem:[%s1359_s8 + $0xe8] sm:$0xff] %v1194_v54 }
 0x13c PF: > { %s13_s16 = sadd.s32 1, %s1233_s16   ;;  %s1422_s12 = smov %s1225_s14 }
 0x13d   : > { %p10_p7 = scmp.ge.s32.totalorder %s13_s16, 10   ;;  %s1423_s13 = smov %s1229_s15 }
 0x13e   : > { %s1424_s14 = smov %s1427_s17  ;;  %s1425_s15 = smov %s1431_s18 }
 0x13f   :  { %12 = sbr.rel (!%p10_p7) target bundleno = 3 (0x3), region = 65 }

</bundles_post_ra>
